<compile_context>
chip_gen: v7x
topology: tpu7x:2x2x1
jax: 0.10.0
libtpu: 0.0.40
codegen_flags: <defaults>
</compile_context>

<pallas_src>
import functools
import math

import jax
import jax.numpy as jnp
from jax import lax
from jax.experimental import pallas as pl
from jax.experimental.pallas import tpu as pltpu


# ----------------------------------------------------------------------------
# Pallas kernel: one (batch, head, q-tile) owns the VMEM softmax state; the
# innermost ("arbitrary") grid axis streams KV tiles with online softmax.
# ----------------------------------------------------------------------------
def _flash_mha_kernel(q_ref, k_ref, v_ref, o_ref, m_scr, l_scr, acc_scr, *,
                      scale):
    ki = pl.program_id(3)

    @pl.when(ki == 0)
    def _init():
        m_scr[...] = jnp.full(m_scr.shape, -jnp.inf, m_scr.dtype)
        l_scr[...] = jnp.zeros(l_scr.shape, l_scr.dtype)
        acc_scr[...] = jnp.zeros(acc_scr.shape, acc_scr.dtype)

    # Scale folded into Q (tq*Dh native-dtype muls, not H*S^2 f32 muls).
    q = q_ref[0] * scale                               # (tq, Dh)
    k = k_ref[0]                                       # (tk, Dh)
    v = v_ref[0]                                       # (tk, Dh)

    # scores = Q K^T, contraction over the last dim of BOTH operands
    # (native dtype in, f32 MXU accumulation out).
    s = lax.dot_general(
        q, k,
        dimension_numbers=(((1,), (1,)), ((), ())),
        preferred_element_type=jnp.float32,
    )                                                  # (tq, tk) f32

    # online softmax update
    m_prev = m_scr[...]                                # (tq, 1)
    m_new = jnp.maximum(m_prev, jnp.max(s, axis=-1, keepdims=True))
    alpha = jnp.exp(m_prev - m_new)                    # rescale of old state
    p = jnp.exp(s - m_new)                             # (tq, tk) f32
    l_scr[...] = alpha * l_scr[...] + jnp.sum(p, axis=-1, keepdims=True)
    acc_scr[...] = alpha * acc_scr[...] + jnp.dot(
        p.astype(v.dtype), v, preferred_element_type=jnp.float32)
    m_scr[...] = m_new

    @pl.when(ki == pl.num_programs(3) - 1)
    def _finalize():
        # single lane-dense (tq, Dh) store; reciprocal runs on the EUP slot.
        o_ref[0] = (acc_scr[...] *
                    pl.reciprocal(l_scr[...], approx=True)).astype(o_ref.dtype)


def flash_mha_pallas(qkv, num_heads, *, tq=128, tk=128):
    """qkv: (B, S, 3*D) fused projection (head-interleaved) -> (B, S, D)."""
    b, s, d3 = qkv.shape
    assert d3 % 3 == 0
    d = d3 // 3
    assert d % num_heads == 0
    head_dim = d // num_heads
    # Per-head column blocks inside the fused qkv buffer must be lane aligned.
    assert head_dim % 128 == 0, "head_dim must be a multiple of 128"

    tq = min(tq, s)
    tk = min(tk, s)
    assert s % tq == 0 and s % tk == 0, "S must be divisible by the Q/KV tiles"
    scale = 1.0 / math.sqrt(head_dim)

    n_q = s // tq
    n_k = s // tk
    grid = (b, num_heads, n_q, n_k)

    # Q/K/V sub-slabs come straight out of the fused (B, S, 3D) buffer via the
    # last-dim block index (h, H + h, 2H + h): the DMA does the head split.
    q_spec = pl.BlockSpec((1, tq, head_dim),
                          lambda bi, h, qi, ki: (bi, qi, h))
    k_spec = pl.BlockSpec((1, tk, head_dim),
                          lambda bi, h, qi, ki: (bi, ki, num_heads + h))
    v_spec = pl.BlockSpec((1, tk, head_dim),
                          lambda bi, h, qi, ki: (bi, ki, 2 * num_heads + h))
    o_spec = pl.BlockSpec((1, tq, head_dim),
                          lambda bi, h, qi, ki: (bi, qi, h))

    itemsize = jnp.dtype(qkv.dtype).itemsize
    # Scheduler hints.
    flops = 4 * b * num_heads * s * s * head_dim           # QK^T + PV
    transcendentals = b * num_heads * s * s                # exp(p)
    bytes_accessed = itemsize * b * num_heads * head_dim * (
        s                      # Q read once per (b, h)
        + 2 * n_q * s          # K and V re-read once per q tile
        + s)                   # output write
    cost = pl.CostEstimate(flops=flops, transcendentals=transcendentals,
                           bytes_accessed=bytes_accessed)

    # Scoped-VMEM limit sized to the real working set (double-buffered blocks
    # + f32 softmax scratch), with headroom; clamped well under v7x's 64 MiB.
    block_bytes = itemsize * head_dim * (tq + tk + tk + tq)     # q, k, v, o
    scratch_bytes = 4 * (tq + tq + tq * head_dim)               # f32 m, l, acc
    vmem_needed = 2 * block_bytes + scratch_bytes
    vmem_limit = int(min(max(4 * vmem_needed, 16 * 1024 * 1024),
                         48 * 1024 * 1024))

    return pl.pallas_call(
        functools.partial(_flash_mha_kernel, scale=scale),
        out_shape=jax.ShapeDtypeStruct((b, s, d), qkv.dtype),
        grid_spec=pltpu.PrefetchScalarGridSpec(
            num_scalar_prefetch=0,
            grid=grid,
            in_specs=[q_spec, k_spec, v_spec],
            out_specs=o_spec,
            scratch_shapes=[
                pltpu.VMEM((tq, 1), jnp.float32),          # running max
                pltpu.VMEM((tq, 1), jnp.float32),          # running denom
                pltpu.VMEM((tq, head_dim), jnp.float32),   # running acc
            ],
        ),
        compiler_params=pltpu.CompilerParams(
            dimension_semantics=("parallel", "parallel", "parallel",
                                 "arbitrary"),
            vmem_limit_bytes=vmem_limit,
        ),
        cost_estimate=cost,
    )(qkv, qkv, qkv)


# ----------------------------------------------------------------------------
# The wrapped attention module (deterministic synthetic params) + AttnWrapper.
# ----------------------------------------------------------------------------
class MultiHeadSelfAttention:
    def __init__(self, hidden, num_heads, key):
        assert hidden % num_heads == 0
        self.hidden = hidden
        self.num_heads = num_heads
        self.head_dim = hidden // num_heads
        kq, kk, kv, ko = jax.random.split(key, 4)
        init = lambda k: (jax.random.normal(k, (hidden, hidden), jnp.float32)
                          * (1.0 / hidden ** 0.5))
        self.wq, self.wk, self.wv, self.wo = init(kq), init(kk), init(kv), init(ko)
        # fused QKV projection weight: one pass over x instead of three.
        self.wqkv = jnp.concatenate([self.wq, self.wk, self.wv], axis=1)  # (D,3D)

    def __call__(self, x):
        # x: (B, S, D).  The fused qkv buffer is handed to the kernel whole;
        # the Q/K/V/head split happens in the BlockSpec DMAs, not in HBM.
        # (HIGHEST precision on the f32 glue matmuls keeps the numeric check
        # against the reference tight; irrelevant for bf16 deployments.)
        qkv = jnp.matmul(x, self.wqkv, precision=lax.Precision.HIGHEST)
        o = flash_mha_pallas(qkv, self.num_heads)          # (B, S, D)
        out = jnp.matmul(o, self.wo, precision=lax.Precision.HIGHEST)
        # mimic HF-style attention returning a tuple
        return (out, None)


class AttnWrapper:
    """Faithful port of the PyTorch AttnWrapper: call attn, stash output[0]."""

    def __init__(self, attn):
        self.attn = attn
        self.activations = None

    def __call__(self, *args, **kwargs):
        output = self.attn(*args, **kwargs)
        self.activations = output[0]
        return output


# ----------------------------------------------------------------------------
# Demo / smoke test.
# ----------------------------------------------------------------------------
if __name__ == "__main__":
    key = jax.random.PRNGKey(0)
    k_x, k_p = jax.random.split(key)

    # Small but layout-friendly shapes: head_dim = 128 (lane/MXU aligned),
    # S = 256 so the online-softmax path runs over 2 KV tiles per q tile.
    B, S, D, H = 2, 256, 256, 2
    x = jax.random.normal(k_x, (B, S, D), jnp.float32)

    attn = MultiHeadSelfAttention(hidden=D, num_heads=H, key=k_p)
    wrapper = AttnWrapper(attn)

    out = wrapper(x)
    jax.block_until_ready(out[0])
    jax.block_until_ready(wrapper.activations)

    # sanity: activations is exactly output[0]
    assert wrapper.activations is out[0]
    assert out[0].shape == (B, S, D)

    # correctness check vs. plain-JAX reference of the same attention
    def ref_attn(x):
        Dh = D // H
        hp = lax.Precision.HIGHEST
        q = jnp.matmul(x, attn.wq, precision=hp).reshape(B, S, H, Dh)
        k = jnp.matmul(x, attn.wk, precision=hp).reshape(B, S, H, Dh)
        v = jnp.matmul(x, attn.wv, precision=hp).reshape(B, S, H, Dh)
        q, k, v = (t.transpose(0, 2, 1, 3) for t in (q, k, v))
        s = jnp.einsum("bhqd,bhkd->bhqk", q, k, precision=hp) / (Dh ** 0.5)
        p = jax.nn.softmax(s, axis=-1)
        o = jnp.einsum("bhqk,bhkd->bhqd", p, v, precision=hp)
        o = o.transpose(0, 2, 1, 3).reshape(B, S, D)
        return jnp.matmul(o, attn.wo, precision=hp)

    ref = ref_attn(x)
    # tolerance relaxed vs. exact because of the approx (EUP) reciprocal in the
    # softmax denominator and bf16-pass MXU accumulation inside the kernel.
    assert jnp.allclose(out[0], ref, atol=5e-3, rtol=5e-3)

    print("KERNEL_OK")
</pallas_src>

<mosaic_0001>
module attributes {stable_mosaic.version = 11 : i64} {
  func.func @_flash_mha_kernel(%arg0: i32, %arg1: i32, %arg2: i32, %arg3: i32, %arg4: memref<1x128x128xf32, #tpu.memory_space<vmem>>, %arg5: memref<1x128x128xf32, #tpu.memory_space<vmem>>, %arg6: memref<1x128x128xf32, #tpu.memory_space<vmem>>, %arg7: memref<1x128x128xf32, #tpu.memory_space<vmem>>, %arg8: memref<128x1xf32, #tpu.memory_space<vmem>>, %arg9: memref<128x1xf32, #tpu.memory_space<vmem>>, %arg10: memref<128x128xf32, #tpu.memory_space<vmem>>) attributes {dimension_semantics = [#tpu.dimension_semantics<parallel>, #tpu.dimension_semantics<parallel>, #tpu.dimension_semantics<parallel>, #tpu.dimension_semantics<arbitrary>], iteration_bounds = array<i64: 2, 2, 2, 2>, scalar_prefetch = 0 : i64, scratch_operands = 3 : i64, tpu.core_type = #tpu.core_type<tc>, window_params = [{transform_indices = @transform_0, window_bounds = array<i64: 1, 128, 128>}, {transform_indices = @transform_1, window_bounds = array<i64: 1, 128, 128>}, {transform_indices = @transform_2, window_bounds = array<i64: 1, 128, 128>}, {transform_indices = @transform_3, window_bounds = array<i64: 1, 128, 128>}]} {
    %c0_i32 = arith.constant 0 : i32
    %0 = arith.cmpi eq, %arg3, %c0_i32 : i32
    %1 = arith.extui %0 : i1 to i32
    %c0_i32_0 = arith.constant 0 : i32
    %2 = arith.cmpi ne, %1, %c0_i32_0 : i32
    scf.if %2 {
      %cst_26 = arith.constant 0xFF800000 : f32
      %37 = vector.broadcast %cst_26 : f32 to vector<128x1xf32>
      %c0_27 = arith.constant 0 : index
      %c0_28 = arith.constant 0 : index
      %38 = vector.load %arg8[%c0_27, %c0_28] : memref<128x1xf32, #tpu.memory_space<vmem>>, vector<128x1xf32>
      tpu.vector_store %arg8[%c0_27, %c0_28], %37 {strides = array<i32>} : memref<128x1xf32, #tpu.memory_space<vmem>>, vector<128x1xf32>,
      %cst_29 = arith.constant 0.000000e+00 : f32
      %39 = vector.broadcast %cst_29 : f32 to vector<128x1xf32>
      %c0_30 = arith.constant 0 : index
      %c0_31 = arith.constant 0 : index
      %40 = vector.load %arg9[%c0_30, %c0_31] : memref<128x1xf32, #tpu.memory_space<vmem>>, vector<128x1xf32>
      tpu.vector_store %arg9[%c0_30, %c0_31], %39 {strides = array<i32>} : memref<128x1xf32, #tpu.memory_space<vmem>>, vector<128x1xf32>,
      %cst_32 = arith.constant 0.000000e+00 : f32
      %41 = vector.broadcast %cst_32 : f32 to vector<128x128xf32>
      %c0_33 = arith.constant 0 : index
      %c0_34 = arith.constant 0 : index
      %42 = vector.load %arg10[%c0_33, %c0_34] : memref<128x128xf32, #tpu.memory_space<vmem>>, vector<128x128xf32>
      tpu.vector_store %arg10[%c0_33, %c0_34], %41 {strides = array<i32>} : memref<128x128xf32, #tpu.memory_space<vmem>>, vector<128x128xf32>,
    } else {
    }
    %c0 = arith.constant 0 : index
    %c0_1 = arith.constant 0 : index
    %c0_2 = arith.constant 0 : index
    %3 = vector.load %arg4[%c0, %c0_1, %c0_2] : memref<1x128x128xf32, #tpu.memory_space<vmem>>, vector<1x128x128xf32>
    %4 = vector.shape_cast %3 : vector<1x128x128xf32> to vector<128x128xf32>
    %cst = arith.constant 0.0883883461 : f32
    %5 = vector.broadcast %cst : f32 to vector<128x128xf32>
    %6 = arith.mulf %4, %5 : vector<128x128xf32>
    %c0_3 = arith.constant 0 : index
    %c0_4 = arith.constant 0 : index
    %c0_5 = arith.constant 0 : index
    %7 = vector.load %arg5[%c0_3, %c0_4, %c0_5] : memref<1x128x128xf32, #tpu.memory_space<vmem>>, vector<1x128x128xf32>
    %8 = vector.shape_cast %7 : vector<1x128x128xf32> to vector<128x128xf32>
    %c0_6 = arith.constant 0 : index
    %c0_7 = arith.constant 0 : index
    %c0_8 = arith.constant 0 : index
    %9 = vector.load %arg6[%c0_6, %c0_7, %c0_8] : memref<1x128x128xf32, #tpu.memory_space<vmem>>, vector<1x128x128xf32>
    %10 = vector.shape_cast %9 : vector<1x128x128xf32> to vector<128x128xf32>
    %cst_9 = arith.constant dense<0.000000e+00> : vector<128x128xf32>
    %11 = tpu.matmul %6, %8, %cst_9 {dimension_numbers = #tpu.dot_dimension_numbers<[1], [1], [0], [0], [0, 0, 1, 0], [], []>} : vector<128x128xf32>, vector<128x128xf32>, vector<128x128xf32> -> vector<128x128xf32>
    %c0_10 = arith.constant 0 : index
    %c0_11 = arith.constant 0 : index
    %12 = vector.load %arg8[%c0_10, %c0_11] : memref<128x1xf32, #tpu.memory_space<vmem>>, vector<128x1xf32>
    %cst_12 = arith.constant dense<0xFF800000> : vector<128xf32>
    %13 = vector.multi_reduction <maximumf>, %11, %cst_12 [1] : vector<128x128xf32> to vector<128xf32>
    %14 = vector.shape_cast %13 : vector<128xf32> to vector<128x1xf32>
    %15 = arith.maximumf %12, %14 : vector<128x1xf32>
    %16 = arith.subf %12, %15 : vector<128x1xf32>
    %17 = math.exp %16 : vector<128x1xf32>
    %18 = vector.broadcast %15 : vector<128x1xf32> to vector<128x128xf32>
    %19 = arith.subf %11, %18 : vector<128x128xf32>
    %20 = math.exp %19 : vector<128x128xf32>
    %c0_13 = arith.constant 0 : index
    %c0_14 = arith.constant 0 : index
    %21 = vector.load %arg9[%c0_13, %c0_14] : memref<128x1xf32, #tpu.memory_space<vmem>>, vector<128x1xf32>
    %22 = arith.mulf %17, %21 : vector<128x1xf32>
    %cst_15 = arith.constant dense<0.000000e+00> : vector<128xf32>
    %23 = vector.multi_reduction <add>, %20, %cst_15 [1] : vector<128x128xf32> to vector<128xf32>
    %24 = vector.shape_cast %23 : vector<128xf32> to vector<128x1xf32>
    %25 = arith.addf %22, %24 : vector<128x1xf32>
    %c0_16 = arith.constant 0 : index
    %c0_17 = arith.constant 0 : index
    %26 = vector.load %arg9[%c0_16, %c0_17] : memref<128x1xf32, #tpu.memory_space<vmem>>, vector<128x1xf32>
    tpu.vector_store %arg9[%c0_16, %c0_17], %25 {strides = array<i32>} : memref<128x1xf32, #tpu.memory_space<vmem>>, vector<128x1xf32>,
    %c0_18 = arith.constant 0 : index
    %c0_19 = arith.constant 0 : index
    %27 = vector.load %arg10[%c0_18, %c0_19] : memref<128x128xf32, #tpu.memory_space<vmem>>, vector<128x128xf32>
    %28 = vector.broadcast %17 : vector<128x1xf32> to vector<128x128xf32>
    %29 = arith.mulf %28, %27 : vector<128x128xf32>
    %cst_20 = arith.constant dense<0.000000e+00> : vector<128x128xf32>
    %30 = tpu.matmul %20, %10, %cst_20 {dimension_numbers = #tpu.dot_dimension_numbers<[1], [0], [0], [1], [0, 0, 1, 1], [], []>} : vector<128x128xf32>, vector<128x128xf32>, vector<128x128xf32> -> vector<128x128xf32>
    %31 = arith.addf %29, %30 : vector<128x128xf32>
    %c0_21 = arith.constant 0 : index
    %c0_22 = arith.constant 0 : index
    %32 = vector.load %arg10[%c0_21, %c0_22] : memref<128x128xf32, #tpu.memory_space<vmem>>, vector<128x128xf32>
    tpu.vector_store %arg10[%c0_21, %c0_22], %31 {strides = array<i32>} : memref<128x128xf32, #tpu.memory_space<vmem>>, vector<128x128xf32>,
    %c0_23 = arith.constant 0 : index
    %c0_24 = arith.constant 0 : index
    %33 = vector.load %arg8[%c0_23, %c0_24] : memref<128x1xf32, #tpu.memory_space<vmem>>, vector<128x1xf32>
    tpu.vector_store %arg8[%c0_23, %c0_24], %15 {strides = array<i32>} : memref<128x1xf32, #tpu.memory_space<vmem>>, vector<128x1xf32>,
    %c1_i32 = arith.constant 1 : i32
    %34 = arith.cmpi eq, %arg3, %c1_i32 : i32
    %35 = arith.extui %34 : i1 to i32
    %c0_i32_25 = arith.constant 0 : i32
    %36 = arith.cmpi ne, %35, %c0_i32_25 : i32
    scf.if %36 {
      %c0_26 = arith.constant 0 : index
      %c0_27 = arith.constant 0 : index
      %37 = vector.load %arg10[%c0_26, %c0_27] : memref<128x128xf32, #tpu.memory_space<vmem>>, vector<128x128xf32>
      %c0_28 = arith.constant 0 : index
      %c0_29 = arith.constant 0 : index
      %38 = vector.load %arg9[%c0_28, %c0_29] : memref<128x1xf32, #tpu.memory_space<vmem>>, vector<128x1xf32>
      %39 = tpu.reciprocal %38 {approx = true} : vector<128x1xf32> -> vector<128x1xf32>
      %40 = vector.broadcast %39 : vector<128x1xf32> to vector<128x128xf32>
      %41 = arith.mulf %37, %40 : vector<128x128xf32>
      %c0_30 = arith.constant 0 : index
      %c0_31 = arith.constant 0 : index
      %c0_32 = arith.constant 0 : index
      %42 = vector.load %arg7[%c0_30, %c0_31, %c0_32] : memref<1x128x128xf32, #tpu.memory_space<vmem>>, vector<1x128x128xf32>
      %43 = vector.shape_cast %42 : vector<1x128x128xf32> to vector<128x128xf32>
      %44 = vector.shape_cast %41 : vector<128x128xf32> to vector<1x128x128xf32>
      tpu.vector_store %arg7[%c0_30, %c0_31, %c0_32], %44 {strides = array<i32>} : memref<1x128x128xf32, #tpu.memory_space<vmem>>, vector<1x128x128xf32>,
    } else {
    }
    return
  }
  func.func @transform_0(%arg0: i32, %arg1: i32, %arg2: i32, %arg3: i32) -> (i32, i32, i32) {
    %c0_i32 = arith.constant 0 : i32
    return %arg0, %arg2, %arg1 : i32, i32, i32
  }
  func.func @transform_1(%arg0: i32, %arg1: i32, %arg2: i32, %arg3: i32) -> (i32, i32, i32) {
    %c2_i32 = arith.constant 2 : i32
    %0 = arith.addi %c2_i32, %arg1 : i32
    %c0_i32 = arith.constant 0 : i32
    return %arg0, %arg3, %0 : i32, i32, i32
  }
  func.func @transform_2(%arg0: i32, %arg1: i32, %arg2: i32, %arg3: i32) -> (i32, i32, i32) {
    %c4_i32 = arith.constant 4 : i32
    %0 = arith.addi %c4_i32, %arg1 : i32
    %c0_i32 = arith.constant 0 : i32
    return %arg0, %arg3, %0 : i32, i32, i32
  }
  func.func @transform_3(%arg0: i32, %arg1: i32, %arg2: i32, %arg3: i32) -> (i32, i32, i32) {
    %c0_i32 = arith.constant 0 : i32
    return %arg0, %arg2, %arg1 : i32, i32, i32
  }
}

</mosaic_0001>

<bundles_post_ra>
// kernel: tpu_custom_call.1
= control target key start
LH: loop header
LB: loop body
LE: loop exit
PB: predicated region body
PF: predicated region fallthrough
CT: control target
= control target key end

     0   :  { %s3350_s0 = inlined_call_operand.hbm [shape: f32[2,256,768], index: 0, kind: input, shape index: {}]   ;;  %s3351_s1 = inlined_call_operand.hbm [shape: f32[2,256,768], index: 1, kind: input, shape index: {}]   ;;  %s3352_s2 = inlined_call_operand.hbm [shape: f32[2,256,768], index: 2, kind: input, shape index: {}]   ;;  %s3353_s3 = inlined_call_operand.hbm [shape: f32[2,256,256], index: 3, kind: output, shape index: {}]  }
   0x1   :  { %3386 = sst [smem:[#allocation35_spill]] %s3350_s0 }
   0x2   :  { %3387 = sst [smem:[#allocation36_spill]] %s3351_s1 }
   0x3   :  { %3388 = sst [smem:[#allocation37_spill]] %s3352_s2 }
   0x4   :  { %3389 = sst [smem:[#allocation38_spill]] %s3353_s3 }
   0x5   :  { %8 = vsyncpa [#allocation6], 0 }
   0x6   :  { %10 = vsyncpa [#allocation6 + $0x1], 0 }
   0x7   :  { %11 = vsyncpa [#allocation9], 0 }
   0x8   :  { %13 = vsyncpa [#allocation9 + $0x1], 0 }
   0x9   :  { %14 = vsyncpa [#allocation7], 0 }
   0xa   :  { %16 = vsyncpa [#allocation7 + $0x1], 0  ;;  %s2436_s12 = smov 0   ;;  %s2438_s13 = smov 0  }
   0xb   :  { %s2440_s14 = smov 0   ;;  %s2442_s15 = smov 0  }
   0xc   :  { %s2444_s16 = smov 0   ;;  %s2446_s17 = smov 0  }
   0xd   :  { %s2448_s18 = smov 0   ;;  %s2450_s19 = smov 0  }
   0xe   :  { %s2452_s20 = smov 0   ;;  %s2454_s21 = smov 0  }
   0xf   :  { %s2456_s22 = smov 0   ;;  %s2458_s23 = smov 0  }
  0x10   :  { %s2460_s24 = smov 0   ;;  %s2462_s25 = smov 0  }
  0x11   :  { %s2464_s26 = smov 0   ;;  %s2466_s27 = smov 0  }
  0x12   :  { %s2468_s28 = smov 0   ;;  %s2470_s29 = smov 0  }
  0x13 LB: > { %3390 = sst [smem:[#allocation16_spill]] %s2332_s12  ;;  %s2525_s30 = sadd.s32 4294967295, %s2400_s29   ;;  %s2400_s29 = sphi %s2470_s29, %s22_s29   ;;  %s2396_s28 = sphi %s2468_s28, %s3470_s28   ;;  %s2392_s27 = sphi %s2466_s27, %s3469_s27   ;;  %s2388_s26 = sphi %s2464_s26, %s3481_s26   ;;  %s2384_s25 = sphi %s2462_s25, %s3480_s25   ;;  %s2380_s24 = sphi %s2460_s24, %s3466_s24   ;;  %s2376_s23 = sphi %s2458_s23, %s3465_s23   ;;  %s2372_s22 = sphi %s2456_s22, %s3479_s22   ;;  %s2368_s21 = sphi %s2454_s21, %s3478_s21   ;;  %s2364_s20 = sphi %s2452_s20, %s3477_s20   ;;  %s2360_s19 = sphi %s2450_s19, %s3476_s19   ;;  %s2356_s18 = sphi %s2448_s18, %s3475_s18   ;;  %s2352_s17 = sphi %s2446_s17, %s3474_s17   ;;  %s2348_s16 = sphi %s2444_s16, %s3473_s16   ;;  %s2344_s15 = sphi %s2442_s15, %s3464_s15   ;;  %s2340_s14 = sphi %s2440_s14, %s3472_s14   ;;  %s2336_s13 = sphi %s2438_s13, %s3471_s13   ;;  %s2332_s12 = sphi %s2436_s12, %s3463_s12  }
  0x14   : > { %3391 = sst [smem:[#allocation17_spill]] %s2336_s13  ;;  %s37_s4 = sadd.s32 1, %s2384_s25 }
  0x15   : > { %3392 = sst [smem:[#allocation18_spill]] %s2348_s16  ;;  %p2528_p0 = scmp.ge.s32.totalorder %s37_s4, 2 }
  0x16   : > { %3393 = sst [smem:[#allocation19_spill]] %s2368_s21  ;;  %p3361_p1 = scmp.eq.s32.totalorder %s2400_s29, 0 }
  0x17   : > { %3394 = sst [smem:[#allocation20_spill]] %s2372_s22  ;;  %p3360_p2 = scmp.eq.s32.totalorder %s2525_s30, 0 }
  0x18   : > { %3395 = sst [smem:[#allocation21_spill]] %s2376_s23  ;;  %s3483_s4 = smov (%p2528_p0, %s37_s4), 0 }
  0x19   : > { %3396 = sst [smem:[#allocation22_spill]] %s2380_s24  ;;  %p98_p3 = scmp.ne.s32.totalorder %s2352_s17, %s2348_s16 }
  0x1a   : > { %3397 = sst [smem:[#allocation23_spill]] %s2392_s27  ;;  %p104_p4 = scmp.ne.s32.totalorder %s2348_s16, %s2344_s15 }
  0x1b   : > { %3398 = sst [smem:[#allocation24_spill]] %s2396_s28  ;;  %p100_p5 = por %p98_p3, %p3361_p1 }
  0x1c   : > { %3400 = sst [smem:[#allocation25_spill]] %s3483_s4  ;;  %p2549_p6 = por %p104_p4, %p3360_p2 }
  0x1d   : > { %p3359_p7 = scmp.lt.s32.totalorder %s2400_s29, 16  ;;  %s3369_s10 = smul.u32 192, %s2396_s28 }
  0x1e   : > { %s3401_s9 = scalar_select %p2549_p6, 1, 0 }
  0x1f   : > { %s217_s11 = sand.u32 1, %s2352_s17   ;;  %s215_s3 = sand.u32 1, %s2400_s29  }
  0x20   : > { %3402 = sst [smem:[#allocation26_spill]] %s3401_s9  ;;  %s1583_s24 = sshll.u32 %s217_s11, 7 }
  0x21   : > { %s1460_s6 = smul.u32 96, %s2384_s25  ;;  %s219_s23 = scalar_lea.vmem [#allocation8], %s1583_s24 }
  0x22   : > { %s231_s22 = sshll.u32 %s219_s23, 4  ;;  %p2560_p8 = pnand %p3359_p7, %p100_p5  ;;  %s2567_s22 = int_to_ptr.vmem [resolvable:$true] %s231_s22 }
  0x23   : > { %s1461_s7 = sadd.s32 %s2392_s27, %s1460_s6  ;;  %s3404_s1 = sld [smem:[#allocation36_spill]] }
  0x24   : > { %s1463_s8 = sadd.s32 %s3369_s10, %s1461_s7  ;;  %s3405_s2 = sld [smem:[#allocation37_spill]] }
  0x25   : > { %s1584_s21 = sshll.u32 %s1463_s8, 7  ;;  %s2580_s6 = scalar_lea.sflag [#allocation9], %s215_s3 }
  0x26   : > { %3407 = sst [smem:[#allocation28_spill]] %s2580_s6  ;;  %p2124_p11 = pneg %p2560_p8 }
  0x29   : > { %s1465_s11 = scalar_lea.hbm %s3404_s1, %s1584_s21  ;;  %s2127_s9 = scalar_lea.hbm %s3404_s1, 49152 }
  0x2a   : > { %s2573_s24 = scalar_lea.hbm %s1465_s11, 256  ;;  %s2578_s13 = scalar_lea.hbm %s3405_s2, %s1584_s21 }
  0x2b   : > { %3406 = sst [smem:[#allocation27_spill]] %s2578_s13  ;;  %s2152_s7 = scalar_lea.hbm %s1465_s11, 2304 }
  0x2c   : > { %p2123_p10 = scmp.ne.s32.totalorder %s2573_s24, %s2152_s7  ;;  %p2128_p3 = scmp.lt.u32.totalorder %s2573_s24, %s3404_s1 }
  0x2d   : > { %p2129_p4 = scmp.lt.u32.totalorder %s2127_s9, %s2152_s7  ;;  %p2131_p7 = scmp.lt.u32.totalorder %s2152_s7, %s2573_s24 }
  0x2e   : > { %p2125_p12 = pnand %p2124_p11, %p2123_p10 }
  0x2f   : > { %p2130_p5 = por %p2129_p4, %p2128_p3 }
  0x30   : > { %p2126_p13 = pneg %p2125_p12 }
  0x31   : > { %p2132_p2 = por %p2131_p7, %p2130_p5 }
  0x33   : > { %p2133_p1 = pnand %p2132_p2, %p2126_p13 }
  0x35   : > { %2136 = shalt.err (!%p2133_p1)
}
  0x36   : > { %s2137_s3 = scalar_lea.vmem %s2567_s22, 2048  ;;  %s2402_s21 = smov [#allocation8]  }
  0x37   : > { %p2138_p10 = scmp.ne.s32.totalorder %s2567_s22, %s2137_s3  ;;  %s2142_s11 = sshll.u32 %s2402_s21, 4  ;;  %s2143_s11 = int_to_ptr.vmem [resolvable:$false] %s2142_s11 }
  0x38   : > { %s2144_s16 = scalar_lea.vmem %s2143_s11, 4096  ;;  %p2145_p6 = scmp.lt.s32.totalorder %s2567_s22, %s2143_s11 }
  0x39   : > { %p2140_p12 = pnand %p2138_p10, %p2124_p11  ;;  %p2146_p3 = scmp.lt.s32.totalorder %s2144_s16, %s2137_s3 }
  0x3b   : > { %p2141_p9 = pneg %p2140_p12  ;;  %p2147_p4 = por %p2146_p3, %p2145_p6 }
  0x3d   : > { %p2148_p7 = pnand %p2147_p4, %p2141_p9 }
  0x3f   : > { %2151 = shalt.err (!%p2148_p7)
}
  0x40   : > { %s3363_s7 = smov 768   ;;  %s3365_s8 = smov 128  }
  0x41   : > { %s3367_s9 = smov 8   ;;  %p265_p1 = scmp.lt.s32.totalorder %s2400_s29, 17 }
  0x42   : > { %1858 = dma.hbm_to_vmem [thread:$0]  (!%p2560_p8), %s2573_s24, 2048, %s2567_s22, %s2580_s6, %s3363_s7, %s3365_s8, %s3367_s9  }
  0x43   : > { %p3408_p2 = scmp.ge.s32.totalorder %s2400_s29, 1  ;;  %s1576_s23 = sadd.s32 4294967294, %s2400_s29  }
  0x44   : > { %s40_s15 = sadd.s32 1, %s2388_s26  ;;  %s44_s3 = sadd.s32 1, %s2392_s27 }
  0x45   : > { %p2613_p6 = pnand %p3408_p2, %p265_p1  ;;  %s3485_s15 = smov (!%p2528_p0, %s40_s15), %s2388_s26 }
  0x46   : > { %p42_p8 = scmp.ge.s32.totalorder %s3485_s15, 2  ;;  %p66_p9 = scmp.ne.s32.totalorder %s2364_s20, %s2360_s19 }
  0x47   : > { %s3409_s12 = scalar_select %p2613_p6, 1, 0 }
  0x48   : > { %p72_p11 = scmp.ne.s32.totalorder %s2360_s19, %s2356_s18  ;;  %s82_s24 = sadd.s32 2, %s2392_s27 }
  0x49   : > { %3410 = sst [smem:[#allocation29_spill]] %s3409_s12  ;;  %s3487_s15 = smov (%p42_p8, %s3485_s15), 0 }
  0x4a   : > { %3411 = sst [smem:[#allocation30_spill]] %s3487_s15  ;;  %s3489_s3 = smov (!%p42_p8, %s44_s3), %s2392_s27 }
  0x4b   : > { %s53_s21 = ssub.s32 %s2388_s26, %s3487_s15  ;;  %p3412_p13 = scmp.eq.s32.totalorder %s2400_s29, 0 }
  0x4c   : > { %p46_p0 = scmp.ge.s32.totalorder %s3489_s3, 2  ;;  %p3414_p10 = scmp.eq.s32.totalorder %s2525_s30, 0 }
  0x4d   : > { %p2639_p5 = por %p3412_p13, %p66_p9  ;;  %s114_s16 = sadd.s32 4, %s2392_s27 }
  0x4e   : > { %p2648_p12 = por %p3414_p10, %p72_p11  ;;  %p164_p3 = scmp.eq.s32.totalorder %s2525_s30, 15 }
  0x4f   : > { %s3491_s3 = smov (%p46_p0, %s3489_s3), 0  ;;  %s3418_s7 = sadd.s32 1, %s2396_s28 }
  0x50   : > { %s3415_s11 = scalar_select %p2648_p12, 1, 0 }
  0x51   : > { %3417 = sst [smem:[#allocation32_spill]] %s3491_s3  ;;  %s3493_s7 = smov (!%p46_p0, %s3418_s7), %s2396_s28 }
  0x52   : > { %3416 = sst [smem:[#allocation31_spill]] %s3415_s11  ;;  %s55_s8 = ssub.s32 %s2392_s27, %s3491_s3 }
  0x53   : > { %s83_s9 = sadd.s32 2, %s3491_s3  ;;  %p50_p4 = scmp.ge.s32.totalorder %s3493_s7, 2 }
  0x54   : > { %s87_s10 = ssub.s32 %s82_s24, %s83_s9  ;;  %s115_s22 = sadd.s32 4, %s3491_s3 }
  0x55   : > { %p2666_p7 = por %p164_p3, %p66_p9  ;;  %s3495_s7 = smov (%p50_p4, %s3493_s7), 0 }
  0x56   : > { %3421 = sst [smem:[#allocation34_spill]] %s3495_s7  ;;  %s119_s15 = ssub.s32 %s114_s16, %s115_s22 }
  0x57   : > { %s3419_s1 = scalar_select %p2666_p7, 1, 0 }
  0x58   : > { %p170_p1 = scmp.eq.s32.totalorder %s1576_s23, 15  ;;  %s52_s11 = ssub.s32 %s2396_s28, %s3495_s7 }
  0x59   : > { %3420 = sst [smem:[#allocation33_spill]] %s3419_s1  ;;  %s190_s9 = sand.u32 1, %s2364_s20  }
  0x5a   : > { %s54_s24 = sor.u32 %s53_s21, %s52_s11  ;;  %s3422_s3 = ssub.s32 %s2384_s25, %s3483_s4 }
  0x5b   : > { %s86_s12 = sor.u32 %s3422_s3, %s52_s11  ;;  %s56_s6 = sor.u32 %s55_s8, %s54_s24 }
  0x5c   : > { %s88_s2 = sor.u32 %s87_s10, %s86_s12  ;;  %p57_p2 = scmp.eq.s32.totalorder %s56_s6, 0 }
  0x5d   : > { %p89_p8 = scmp.eq.s32.totalorder %s88_s2, 0  ;;  %s120_s1 = sor.u32 %s119_s15, %s86_s12 }
  0x5e   : > { %p2681_p9 = por %p170_p1, %p72_p11  ;;  %s3424_s23 = sadd.s32 1, %s2364_s20 }
  0x5f   : > { %s2688_s22 = scalar_select %p57_p2, %s2364_s20, %s3424_s23  }
  0x60   : > { %s3423_s13 = scalar_select %p2681_p9, 1, 0 }
  0x61   : > { %s3425_s16 = sadd.s32 1, %s2352_s17  ;;  %p2695_p13 = scmp.eq.s32.totalorder %s120_s1, 0 }
  0x62   : > { %s2693_s7 = scalar_select %p89_p8, %s2352_s17, %s3425_s16  }
  0x63   : > { %s1579_s8 = sshll.u32 %s190_s9, 7  ;;  %s1842_s10 = smul.u32 96, %s2388_s26 }
  0x64   : > { %p3427_p0 = scmp.lt.s32.totalorder %s2400_s29, 16  ;;  %s194_s12 = scalar_lea.vmem [#allocation5], %s1579_s8 }
  0x65   : > { %s200_s6 = sadd.s32 %s2392_s27, %s1842_s10  ;;  %s205_s15 = sshll.u32 %s194_s12, 4  ;;  %s2711_s15 = int_to_ptr.vmem [resolvable:$true] %s205_s15 }
  0x66   : > { %p2704_p10 = pnand %p3427_p0, %p2639_p5  ;;  %s3429_s3 = smul.u32 192, %s2396_s28 }
  0x67   : > { %s3430_s0 = sld [smem:[#allocation35_spill]]  ;;  %s2718_s5 = scalar_lea.sflag [#allocation6], %s190_s9 }
  0x68   : > { %s202_s11 = sadd.s32 %s3429_s3, %s200_s6  ;;  %p2155_p5 = pneg %p2704_p10 }
  0x69   : > { %s1582_s1 = sshll.u32 %s202_s11, 7 }
  0x6d   : > { %s2716_s16 = scalar_lea.hbm %s3430_s0, %s1582_s1  ;;  %s2158_s6 = scalar_lea.hbm %s3430_s0, 49152 }
  0x6e   : > { %s2153_s4 = scalar_lea.hbm %s2716_s16, 2048  ;;  %p2159_p1 = scmp.lt.u32.totalorder %s2716_s16, %s3430_s0 }
  0x6f   : > { %p2154_p11 = scmp.ne.s32.totalorder %s2716_s16, %s2153_s4  ;;  %p2160_p2 = scmp.lt.u32.totalorder %s2158_s6, %s2153_s4 }
  0x70   : > { %p2162_p0 = scmp.lt.u32.totalorder %s2153_s4, %s2716_s16 }
  0x71   : > { %p2156_p3 = pnand %p2155_p5, %p2154_p11  ;;  %p2161_p8 = por %p2160_p2, %p2159_p1 }
  0x73   : > { %p2157_p4 = pneg %p2156_p3  ;;  %p2163_p9 = por %p2162_p0, %p2161_p8 }
  0x75   : > { %p2164_p7 = pnand %p2163_p9, %p2157_p4 }
  0x77   : > { %2167 = shalt.err (!%p2164_p7)
}
  0x78   : > { %s2168_s9 = scalar_lea.vmem %s2711_s15, 2048  ;;  %s2406_s11 = smov [#allocation5]  }
  0x79   : > { %p2169_p11 = scmp.ne.s32.totalorder %s2711_s15, %s2168_s9  ;;  %s2173_s1 = sshll.u32 %s2406_s11, 4  ;;  %s2174_s1 = int_to_ptr.vmem [resolvable:$false] %s2173_s1 }
  0x7a   : > { %s2175_s24 = scalar_lea.vmem %s2174_s1, 4096  ;;  %p2176_p6 = scmp.lt.s32.totalorder %s2711_s15, %s2174_s1 }
  0x7b   : > { %p2171_p3 = pnand %p2169_p11, %p2155_p5  ;;  %p2177_p1 = scmp.lt.s32.totalorder %s2175_s24, %s2168_s9 }
  0x7d   : > { %p2172_p12 = pneg %p2171_p3  ;;  %p2178_p2 = por %p2177_p1, %p2176_p6 }
  0x7f   : > { %p2179_p8 = pnand %p2178_p2, %p2172_p12 }
  0x81   : > { %2182 = shalt.err (!%p2179_p8)
}
  0x82   : > { %s3431_s4 = smov 8   ;;  %s3432_s23 = smov 128  }
  0x83   : > { %s3433_s8 = smov 768   ;;  %s3434_s10 = sld [smem:[#allocation17_spill]] }
  0x84   : > { %s3435_s6 = sld [smem:[#allocation16_spill]]  ;;  %s3436_s12 = sld [smem:[#allocation27_spill]] }
  0x85   : > { %1855 = dma.hbm_to_vmem [thread:$0]  (!%p2704_p10), %s2716_s16, 2048, %s2711_s15, %s2718_s5, %s3433_s8, %s3432_s23, %s3431_s4  }
  0x86   : > { %s123_s2 = sadd.s32 1, %s2340_s14  ;;  %s243_s9 = sand.u32 1, %s2340_s14  }
  0x87   : > { %s2753_s3 = scalar_select %p2695_p13, %s2340_s14, %s123_s2  }
  0x88   : > { %p3437_p7 = scmp.eq.s32.totalorder %s2400_s29, 0  ;;  %p3438_p5 = scmp.eq.s32.totalorder %s2525_s30, 0 }
  0x89   : > { %p130_p6 = scmp.ne.s32.totalorder %s2340_s14, %s3434_s10  ;;  %s1585_s15 = sshll.u32 %s243_s9, 7 }
  0x8a   : > { %p136_p12 = scmp.ne.s32.totalorder %s3434_s10, %s3435_s6  ;;  %s2769_s1 = scalar_lea.hbm %s3436_s12, 512 }
  0x8b   : > { %p132_p9 = por %p130_p6, %p3437_p7  ;;  %p3440_p10 = scmp.lt.s32.totalorder %s2400_s29, 16 }
  0x8c   : > { %p2764_p4 = por %p136_p12, %p3438_p5  ;;  %s245_s16 = scalar_lea.vmem [#allocation10], %s1585_s15 }
  0x8d   : > { %p2773_p0 = pnand %p3440_p10, %p132_p9  ;;  %s257_s5 = sshll.u32 %s245_s16, 4  ;;  %s2777_s5 = int_to_ptr.vmem [resolvable:$true] %s257_s5 }
  0x8e   : > { %s2213_s24 = scalar_lea.hbm %s3436_s12, 2560  ;;  %s3442_s2 = sld [smem:[#allocation37_spill]] }
  0x8f   : > { %p2184_p13 = scmp.ne.s32.totalorder %s2769_s1, %s2213_s24  ;;  %p2185_p11 = pneg %p2773_p0 }
  0x90   : > { %p2192_p12 = scmp.lt.u32.totalorder %s2213_s24, %s2769_s1 }
  0x91   : > { %p2186_p3 = pnand %p2185_p11, %p2184_p13 }
  0x93   : > { %p2187_p1 = pneg %p2186_p3 }
  0x94   : > { %s2188_s9 = scalar_lea.hbm %s3442_s2, 49152  ;;  %p2189_p2 = scmp.lt.u32.totalorder %s2769_s1, %s3442_s2 }
  0x95   : > { %p2190_p8 = scmp.lt.u32.totalorder %s2188_s9, %s2213_s24 }
  0x97   : > { %p2191_p6 = por %p2190_p8, %p2189_p2 }
  0x99   : > { %p2193_p7 = por %p2192_p12, %p2191_p6 }
  0x9b   : > { %p2194_p9 = pnand %p2193_p7, %p2187_p1 }
  0x9d   : > { %2197 = shalt.err (!%p2194_p9)
}
  0x9e   : > { %s2198_s12 = scalar_lea.vmem %s2777_s5, 2048  ;;  %s2407_s15 = smov [#allocation10]  }
  0x9f   : > { %p2199_p5 = scmp.ne.s32.totalorder %s2777_s5, %s2198_s12  ;;  %s2203_s16 = sshll.u32 %s2407_s15, 4  ;;  %s2204_s16 = int_to_ptr.vmem [resolvable:$false] %s2203_s16 }
  0xa0   : > { %s2205_s0 = scalar_lea.vmem %s2204_s16, 4096  ;;  %p2206_p3 = scmp.lt.s32.totalorder %s2777_s5, %s2204_s16 }
  0xa1   : > { %p2201_p10 = pnand %p2199_p5, %p2185_p11  ;;  %p2207_p2 = scmp.lt.s32.totalorder %s2205_s0, %s2198_s12 }
  0xa3   : > { %p2202_p13 = pneg %p2201_p10  ;;  %p2208_p8 = por %p2207_p2, %p2206_p3 }
  0xa5   : > { %p2209_p6 = pnand %p2208_p8, %p2202_p13 }
  0xa7   : > { %2212 = shalt.err (!%p2209_p6)
}
  0xa8   : > { %s3443_s28 = sld [smem:[#allocation28_spill]]  ;;  %s3444_s24 = sld [smem:[#allocation29_spill]] }
  0xae   : > { %1861 = dma.hbm_to_vmem [thread:$0]  (!%p2773_p0), %s2769_s1, 2048, %s2777_s5, %s3443_s28, %s3433_s8, %s3432_s23, %s3431_s4  }
  0xaf   : > { %p3445_p11 = scmp.ne.s32.totalorder %s3444_s24, 0 }
  0xb0   : > { %s3446_s10 = sld [smem:[#allocation31_spill]] (!%p3445_p11)  ;;  %s2811_s6 = sand.u32 (!%p3445_p11), 1, %s2360_s19  }
  0xb1   : > { %269 = sbr.rel (%p3445_p11) target bundleno = 1225 (0x4c9), region = 32  ;;  %s1588_s2 = sshll.u32 (!%p3445_p11), %s2811_s6, 7 }
  0xb2   : > { %s272_s9 = scalar_lea.sflag (!%p3445_p11), [#allocation6], %s2811_s6  ;;  %s2815_s12 = scalar_lea.vmem (!%p3445_p11), [#allocation5], %s1588_s2 }
  0xb6   : > { %p3447_p1 = scmp.ne.s32.totalorder (!%p3445_p11), %s3446_s10, 0 }
  0xb8   : > { %2315 = dma.done.wait (%p3447_p1), %s272_s9, 2048  }
  0xb9   : > { %2317 = vsyncadd (%p3447_p1), %s272_s9, 4294965248  ;;  %s3448_s4 = sld [smem:[#allocation18_spill]]  ;;  %s3449_s23 = sld [smem:[#allocation26_spill]] }
  0xba   : > { %s280_s8 = sand.u32 1, %s2525_s30  }
  0xbb   : > { %s281_s5 = scalar_lea.sflag [#allocation9], %s280_s8 }
  0xbf   : > { %s282_s1 = sand.u32 1, %s3448_s4   ;;  %p3450_p0 = scmp.ne.s32.totalorder %s3449_s23, 0 }
  0xc0   : > { %s1589_s21 = sshll.u32 %s282_s1, 7 }
  0xc1   : > { %s2823_s15 = scalar_lea.vmem [#allocation8], %s1589_s21 }
  0xc2   : > { %2319 = dma.done.wait (%p3450_p0), %s281_s5, 2048  }
  0xc3   : > { %2321 = vsyncadd (%p3450_p0), %s281_s5, 4294965248  ;;  %s3451_s16 = sld [smem:[#allocation17_spill]] }
  0xc9   : > { %s291_s0 = sand.u32 1, %s3451_s16  }
  0xca   : > { %s1590_s28 = sshll.u32 %s291_s0, 7 }
  0xcb   : > { %s2830_s24 = scalar_lea.vmem [#allocation10], %s1590_s28 }
  0xcc   : > { %2323 = dma.done.wait (%p2764_p4), %s281_s5, 2048  }
  0xcd   : > { %2325 = vsyncadd (%p2764_p4), %s281_s5, 4294965248  ;;  %s2836_s30 = scalar_lea.vmem [#allocation11], %s1588_s2  ;;  %s3452_s10 = sld [smem:[#allocation19_spill]] }
  0xd3   : > { %p1592_p12 = scmp.ne.s32.totalorder %s3452_s10, 0 }
  0xd4   : > { %vm336_vm0 = vcmask (!%p1592_p12), 7168   ;;  %v2408_v0 = vmov (!%p1592_p12), -inf   ;;  %v2409_v1 = vmov (!%p1592_p12), 0.0  }
  0xd5   : > { %335 = sbr.rel (%p1592_p12) target bundleno = 237 (0xed), region = 48  ;;  %337 = vst.msk [vmem:[#allocation2] sm:$0xff] (!%p1592_p12), %vm336_vm0, %v2408_v0  ;;  %338 = vst.msk [vmem:[#allocation2 + $0x8] sm:$0xff] (!%p1592_p12), %vm336_vm0, %v2408_v0 }
  0xd6   : > { %339 = vst.msk [vmem:[#allocation2 + $0x10] sm:$0xff] (!%p1592_p12), %vm336_vm0, %v2408_v0  ;;  %340 = vst.msk [vmem:[#allocation2 + $0x18] sm:$0xff] (!%p1592_p12), %vm336_vm0, %v2408_v0 }
  0xd7   : > { %341 = vst.msk [vmem:[#allocation2 + $0x20] sm:$0xff] (!%p1592_p12), %vm336_vm0, %v2408_v0  ;;  %342 = vst.msk [vmem:[#allocation2 + $0x28] sm:$0xff] (!%p1592_p12), %vm336_vm0, %v2408_v0 }
  0xd8   : > { %343 = vst.msk [vmem:[#allocation2 + $0x30] sm:$0xff] (!%p1592_p12), %vm336_vm0, %v2408_v0  ;;  %344 = vst.msk [vmem:[#allocation2 + $0x38] sm:$0xff] (!%p1592_p12), %vm336_vm0, %v2408_v0 }
  0xd9   : > { %345 = vst.msk [vmem:[#allocation2 + $0x40] sm:$0xff] (!%p1592_p12), %vm336_vm0, %v2408_v0  ;;  %346 = vst.msk [vmem:[#allocation2 + $0x48] sm:$0xff] (!%p1592_p12), %vm336_vm0, %v2408_v0 }
  0xda   : > { %347 = vst.msk [vmem:[#allocation2 + $0x50] sm:$0xff] (!%p1592_p12), %vm336_vm0, %v2408_v0  ;;  %348 = vst.msk [vmem:[#allocation2 + $0x58] sm:$0xff] (!%p1592_p12), %vm336_vm0, %v2408_v0 }
  0xdb   : > { %349 = vst.msk [vmem:[#allocation2 + $0x60] sm:$0xff] (!%p1592_p12), %vm336_vm0, %v2408_v0  ;;  %350 = vst.msk [vmem:[#allocation2 + $0x68] sm:$0xff] (!%p1592_p12), %vm336_vm0, %v2408_v0 }
  0xdc   : > { %351 = vst.msk [vmem:[#allocation2 + $0x70] sm:$0xff] %vm336_vm0, %v2408_v0  ;;  %352 = vst.msk [vmem:[#allocation2 + $0x78] sm:$0xff] %vm336_vm0, %v2408_v0 }
  0xdd   : > { %353 = vst.msk [vmem:[#allocation3] sm:$0xff] %vm336_vm0, %v2409_v1  ;;  %354 = vst.msk [vmem:[#allocation3 + $0x8] sm:$0xff] %vm336_vm0, %v2409_v1 }
  0xde   : > { %355 = vst.msk [vmem:[#allocation3 + $0x10] sm:$0xff] %vm336_vm0, %v2409_v1  ;;  %356 = vst.msk [vmem:[#allocation3 + $0x18] sm:$0xff] %vm336_vm0, %v2409_v1 }
  0xdf   : > { %357 = vst.msk [vmem:[#allocation3 + $0x20] sm:$0xff] %vm336_vm0, %v2409_v1  ;;  %358 = vst.msk [vmem:[#allocation3 + $0x28] sm:$0xff] %vm336_vm0, %v2409_v1 }
  0xe0   : > { %359 = vst.msk [vmem:[#allocation3 + $0x30] sm:$0xff] %vm336_vm0, %v2409_v1  ;;  %360 = vst.msk [vmem:[#allocation3 + $0x38] sm:$0xff] %vm336_vm0, %v2409_v1 }
  0xe1   : > { %361 = vst.msk [vmem:[#allocation3 + $0x40] sm:$0xff] %vm336_vm0, %v2409_v1  ;;  %362 = vst.msk [vmem:[#allocation3 + $0x48] sm:$0xff] %vm336_vm0, %v2409_v1 }
  0xe2   : > { %363 = vst.msk [vmem:[#allocation3 + $0x50] sm:$0xff] %vm336_vm0, %v2409_v1  ;;  %364 = vst.msk [vmem:[#allocation3 + $0x58] sm:$0xff] %vm336_vm0, %v2409_v1 }
  0xe3   : > { %365 = vst.msk [vmem:[#allocation3 + $0x60] sm:$0xff] %vm336_vm0, %v2409_v1  ;;  %366 = vst.msk [vmem:[#allocation3 + $0x68] sm:$0xff] %vm336_vm0, %v2409_v1 }
  0xe4   : > { %367 = vst.msk [vmem:[#allocation3 + $0x70] sm:$0xff] %vm336_vm0, %v2409_v1  ;;  %368 = vst.msk [vmem:[#allocation3 + $0x78] sm:$0xff] %vm336_vm0, %v2409_v1 }
  0xe5   : > { %369 = vst [vmem:[#allocation4] sm:$0xff] %v2409_v1  ;;  %370 = vst [vmem:[#allocation4 + $0x8] sm:$0xff] %v2409_v1 }
  0xe6   : > { %371 = vst [vmem:[#allocation4 + $0x10] sm:$0xff] %v2409_v1  ;;  %372 = vst [vmem:[#allocation4 + $0x18] sm:$0xff] %v2409_v1 }
  0xe7   : > { %373 = vst [vmem:[#allocation4 + $0x20] sm:$0xff] %v2409_v1  ;;  %374 = vst [vmem:[#allocation4 + $0x28] sm:$0xff] %v2409_v1 }
  0xe8   : > { %375 = vst [vmem:[#allocation4 + $0x30] sm:$0xff] %v2409_v1  ;;  %376 = vst [vmem:[#allocation4 + $0x38] sm:$0xff] %v2409_v1 }
  0xe9   : > { %377 = vst [vmem:[#allocation4 + $0x40] sm:$0xff] %v2409_v1  ;;  %378 = vst [vmem:[#allocation4 + $0x48] sm:$0xff] %v2409_v1 }
  0xea   : > { %379 = vst [vmem:[#allocation4 + $0x50] sm:$0xff] %v2409_v1  ;;  %380 = vst [vmem:[#allocation4 + $0x58] sm:$0xff] %v2409_v1 }
  0xeb   : > { %381 = vst [vmem:[#allocation4 + $0x60] sm:$0xff] %v2409_v1  ;;  %382 = vst [vmem:[#allocation4 + $0x68] sm:$0xff] %v2409_v1 }
  0xec   : > { %383 = vst [vmem:[#allocation4 + $0x70] sm:$0xff] %v2409_v1  ;;  %384 = vst [vmem:[#allocation4 + $0x78] sm:$0xff] %v2409_v1 }
  0xed PF: > { %v417_v2 = vld [vmem:[%s2823_s15] sm:$0xff]  ;;  %v418_v3 = vld [vmem:[%s2823_s15 + $0x8] sm:$0xff]  ;;  %v419_v4 = vld [vmem:[%s2823_s15 + $0x10] sm:$0xff]  ;;  %vm914_vm1 = vcmask 7168   ;;  %s3453_s11 = sld [smem:[#allocation19_spill]] }
  0xee   : > { %v1778_v5 = vpack.c.bf16 %v418_v3, %v417_v2  ;;  %v420_v6 = vld [vmem:[%s2823_s15 + $0x18] sm:$0xff]  ;;  %v385_v8 = vld [vmem:[%s2815_s12] sm:$0xff]  ;;  %v422_v10 = vld [vmem:[%s2823_s15 + $0x28] sm:$0xff] }
  0xef   : > { %v1782_v7 = vpack.c.bf16 %v420_v6, %v419_v4  ;;  %v421_v9 = vld [vmem:[%s2823_s15 + $0x20] sm:$0xff]  ;;  %v401_v11 = vmul.f32 0.088388346, %v385_v8  ;;  %v423_v13 = vld [vmem:[%s2823_s15 + $0x30] sm:$0xff]  ;;  %v424_v14 = vld [vmem:[%s2823_s15 + $0x38] sm:$0xff]  ;;  %v2410_v4 = vmov 0  }
  0xf0   : > { %1779 = vmatprep.subr.bf16.mxu0 %v1778_v5  ;;  %v1786_v12 = vpack.c.bf16 %v422_v10, %v421_v9  ;;  %v1790_v15 = vpack.c.bf16 %v424_v14, %v423_v13  ;;  %v425_v16 = vld [vmem:[%s2823_s15 + $0x40] sm:$0xff]  ;;  %v426_v17 = vld [vmem:[%s2823_s15 + $0x48] sm:$0xff]  ;;  %v427_v19 = vld [vmem:[%s2823_s15 + $0x50] sm:$0xff]  ;;  %2022 = vset.pattern.permute.xlu0 %v2410_v4 }
  0xf1   : > { %1781 = vmatpush3.bf16.xpose.msra.mxu0 %v1778_v5  ;;  %1698 = vmatprep.mubr.f32.mxu0 %v401_v11  ;;  %v1794_v18 = vpack.c.bf16 %v426_v17, %v425_v16  ;;  %v428_v20 = vld [vmem:[%s2823_s15 + $0x58] sm:$0xff]  ;;  %v429_v22 = vld [vmem:[%s2823_s15 + $0x60] sm:$0xff]  ;;  %v430_v23 = vld [vmem:[%s2823_s15 + $0x68] sm:$0xff] }
  0xf2   : > { %1783 = vmatprep.subr.bf16.mxu0 %v1782_v7  ;;  %v1798_v21 = vpack.c.bf16 %v428_v20, %v427_v19  ;;  %v1802_v24 = vpack.c.bf16 %v430_v23, %v429_v22  ;;  %v431_v25 = vld [vmem:[%s2823_s15 + $0x70] sm:$0xff]  ;;  %v432_v26 = vld [vmem:[%s2823_s15 + $0x78] sm:$0xff]  ;;  %v386_v28 = vld [vmem:[%s2815_s12 + $0x8] sm:$0xff]  ;;  %2023 = vset.pattern.permute.xlu1 %v2410_v4 }
  0xf3   : > { %v1806_v27 = vpack.c.bf16 %v432_v26, %v431_v25  ;;  %v387_v29 = vld [vmem:[%s2815_s12 + $0x10] sm:$0xff]  ;;  %v402_v30 = vmul.f32 0.088388346, %v386_v28  ;;  %v388_v32 = vld [vmem:[%s2815_s12 + $0x18] sm:$0xff]  ;;  %v389_v33 = vld [vmem:[%s2815_s12 + $0x20] sm:$0xff]  ;;  %p1593_p4 = scmp.ne.s32.totalorder %s3453_s11, 1 }
  0xf4   : > { %v403_v31 = vmul.f32 0.088388346, %v387_v29  ;;  %v404_v34 = vmul.f32 0.088388346, %v388_v32  ;;  %v405_v35 = vmul.f32 0.088388346, %v389_v33 }
  0xf5   : > { %v390_v36 = vld [vmem:[%s2815_s12 + $0x28] sm:$0xff]  ;;  %v391_v37 = vld [vmem:[%s2815_s12 + $0x30] sm:$0xff]  ;;  %v392_v40 = vld [vmem:[%s2815_s12 + $0x38] sm:$0xff] }
  0xf6   : > { %v406_v38 = vmul.f32 0.088388346, %v390_v36  ;;  %v407_v39 = vmul.f32 0.088388346, %v391_v37  ;;  %v393_v41 = vld [vmem:[%s2815_s12 + $0x40] sm:$0xff]  ;;  %v394_v44 = vld [vmem:[%s2815_s12 + $0x48] sm:$0xff] }
  0xf7   : > { %v408_v42 = vmul.f32 0.088388346, %v392_v40  ;;  %v409_v43 = vmul.f32 0.088388346, %v393_v41  ;;  %v395_v45 = vld [vmem:[%s2815_s12 + $0x50] sm:$0xff]  ;;  %v396_v48 = vld [vmem:[%s2815_s12 + $0x58] sm:$0xff] }
  0xf8   : > { %v410_v46 = vmul.f32 0.088388346, %v394_v44  ;;  %v411_v47 = vmul.f32 0.088388346, %v395_v45  ;;  %v397_v49 = vld [vmem:[%s2815_s12 + $0x60] sm:$0xff]  ;;  %v398_v52 = vld [vmem:[%s2815_s12 + $0x68] sm:$0xff] }
  0xf9   : > { %1785 = vmatpush3.bf16.xpose.msra.mxu0 %v1782_v7  ;;  %v412_v50 = vmul.f32 0.088388346, %v396_v48  ;;  %v413_v51 = vmul.f32 0.088388346, %v397_v49  ;;  %v399_v53 = vld [vmem:[%s2815_s12 + $0x70] sm:$0xff]  ;;  %v400_v56 = vld [vmem:[%s2815_s12 + $0x78] sm:$0xff] }
  0xfa   : > { %1787 = vmatprep.subr.bf16.mxu0 %v1786_v12  ;;  %v414_v54 = vmul.f32 0.088388346, %v398_v52  ;;  %v415_v55 = vmul.f32 0.088388346, %v399_v53  ;;  %v416_v57 = vmul.f32 0.088388346, %v400_v56 }
  0xfb   : > { %v433_v11 = vld [vmem:[%s2830_s24] sm:$0xff]  ;;  %v435_v13 = vld [vmem:[%s2830_s24 + $0x10] sm:$0xff]  ;;  %v2964_v26 = vld [vmem:[#allocation2 + $0x18] sm:$0xff] }
  0xfc   : > { %v437_v17 = vld [vmem:[%s2830_s24 + $0x20] sm:$0xff]  ;;  %v439_v20 = vld [vmem:[%s2830_s24 + $0x30] sm:$0xff]  ;;  %v446_v48 = vld [vmem:[%s2830_s24 + $0x68] sm:$0xff] }
  0xfd   : > { %v2959_v23 = vld [vmem:[#allocation2] sm:$0xff]  ;;  %v3000_v45 = vld [vmem:[#allocation2 + $0x30] sm:$0xff]  ;;  %v3008_v52 = vld [vmem:[#allocation2 + $0x38] sm:$0xff] }
  0xfe   : > { %v441_v29 = vld [vmem:[%s2830_s24 + $0x40] sm:$0xff]  ;;  %v447_v56 = vld [vmem:[%s2830_s24 + $0x70] sm:$0xff] }
  0xff   : > { %v2983_v36 = vld [vmem:[#allocation2 + $0x20] sm:$0xff] }
 0x101   : > { %1789 = vmatpush3.bf16.xpose.msra.mxu0 %v1786_v12  ;;  %v434_v12 = vld [vmem:[%s2830_s24 + $0x8] sm:$0xff] }
 0x102   : > { %1791 = vmatprep.subr.bf16.mxu0 %v1790_v15  ;;  %v1810_v14 = vpack.c.bf16 %v434_v12, %v433_v11 }
 0x104   : > { %1811 = vmatprep.subr.bf16.mxu1 %v1810_v14 }
 0x105   : > { %1813 = vmatpush3.bf16.msra.mxu1 %v1810_v14 }
 0x109   : > { %1793 = vmatpush3.bf16.xpose.msra.mxu0 %v1790_v15  ;;  %v436_v15 = vld [vmem:[%s2830_s24 + $0x18] sm:$0xff] }
 0x10a   : > { %1795 = vmatprep.subr.bf16.mxu0 %v1794_v18  ;;  %v1814_v16 = vpack.c.bf16 %v436_v15, %v435_v13  ;;  %v603_v13 = vld [vmem:[#allocation2 + $0x48] sm:$0xff]  ;;  %v3026_v15 = vld [vmem:[#allocation2 + $0x50] sm:$0xff] }
 0x10c   : > { %1815 = vmatprep.subr.bf16.mxu1 %v1814_v16 }
 0x10d   : > { %1817 = vmatpush3.bf16.msra.mxu1 %v1814_v16 }
 0x111   : > { %1797 = vmatpush3.bf16.xpose.msra.mxu0 %v1794_v18  ;;  %v438_v18 = vld [vmem:[%s2830_s24 + $0x28] sm:$0xff] }
 0x112   : > { %1799 = vmatprep.subr.bf16.mxu0 %v1798_v21  ;;  %v1818_v19 = vpack.c.bf16 %v438_v18, %v437_v17 }
 0x114   : > { %1819 = vmatprep.subr.bf16.mxu1 %v1818_v19 }
 0x115   : > { %1821 = vmatpush3.bf16.msra.mxu1 %v1818_v19 }
 0x119   : > { %1801 = vmatpush3.bf16.xpose.msra.mxu0 %v1798_v21  ;;  %v440_v21 = vld [vmem:[%s2830_s24 + $0x38] sm:$0xff] }
 0x11a   : > { %1803 = vmatprep.subr.bf16.mxu0 %v1802_v24  ;;  %v1822_v22 = vpack.c.bf16 %v440_v21, %v439_v20  ;;  %v605_v20 = vld [vmem:[#allocation2 + $0x58] sm:$0xff] }
 0x11c   : > { %1823 = vmatprep.subr.bf16.mxu1 %v1822_v22 }
 0x11d   : > { %1825 = vmatpush3.bf16.msra.mxu1 %v1822_v22  ;;  %v3036_v22 = vld [vmem:[#allocation2 + $0x60] sm:$0xff] }
 0x121   : > { %1805 = vmatpush3.bf16.xpose.msra.mxu0 %v1802_v24 }
 0x122   : > { %1807 = vmatprep.subr.bf16.mxu0 %v1806_v27 }
 0x129   : > { %1809 = vmatpush3.bf16.xpose.msra.mxu0 %v1806_v27  ;;  %v2966_v27 = vld [vmem:[#allocation2 + $0x8] sm:$0xff] }
 0x130   : > { %1699 = vmatmul.mubr.f32.vlgmr.msra.gmra.mrb[0].mxu0 %v402_v30  ;;  %v442_v30 = vld [vmem:[%s2830_s24 + $0x48] sm:$0xff] }
 0x131   : > { %1701 = vmatprep.mubr.f32.mxu0 %v403_v31  ;;  %v1826_v33 = vpack.c.bf16 %v442_v30, %v441_v29  ;;  %v607_v30 = vld [vmem:[#allocation2 + $0x68] sm:$0xff] }
 0x133   : > { %1827 = vmatprep.subr.bf16.mxu1 %v1826_v33 }
 0x134   : > { %1702 = vmatmul.mubr.f32.gmra.mrb[2].mxu0 %v404_v34  ;;  %1829 = vmatpush3.bf16.msra.mxu1 %v1826_v33  ;;  %v3047_v33 = vld [vmem:[#allocation2 + $0x70] sm:$0xff] }
 0x135   : > { %1704 = vmatprep.mubr.f32.mxu0 %v405_v35  ;;  %v2979_v35 = vld [vmem:[#allocation2 + $0x10] sm:$0xff] }
 0x138   : > { %1705 = vmatmul.mubr.f32.gmra.mrb[4].mxu0 %v406_v38  ;;  %v443_v38 = vld [vmem:[%s2830_s24 + $0x50] sm:$0xff] }
 0x139   : > { %1707 = vmatprep.mubr.f32.mxu0 %v407_v39  ;;  %v444_v39 = vld [vmem:[%s2830_s24 + $0x58] sm:$0xff] }
 0x13c   : > { %1708 = vmatmul.mubr.f32.gmra.mrb[6].mxu0 %v408_v42  ;;  %v1830_v42 = vpack.c.bf16 %v444_v39, %v443_v38 }
 0x13d   : > { %1710 = vmatprep.mubr.f32.mxu0 %v409_v43  ;;  %v2993_v43 = vld [vmem:[#allocation2 + $0x28] sm:$0xff] }
 0x13e   : > { %1831 = vmatprep.subr.bf16.mxu1 %v1830_v42 }
 0x13f   : > { %1833 = vmatpush3.bf16.msra.mxu1 %v1830_v42 }
 0x140   : > { %1711 = vmatmul.mubr.f32.gmra.mrb[8].mxu0 %v410_v46 }
 0x141   : > { %1713 = vmatprep.mubr.f32.mxu0 %v411_v47  ;;  %v445_v47 = vld [vmem:[%s2830_s24 + $0x60] sm:$0xff] }
 0x144   : > { %1714 = vmatmul.mubr.f32.gmra.mrb[10].mxu0 %v412_v50 }
 0x145   : > { %1716 = vmatprep.mubr.f32.mxu0 %v413_v51  ;;  %v1834_v51 = vpack.c.bf16 %v446_v48, %v445_v47 }
 0x147   : > { %1835 = vmatprep.subr.bf16.mxu1 %v1834_v51 }
 0x148   : > { %1717 = vmatmul.mubr.f32.gmra.mrb[12].mxu0 %v414_v54  ;;  %v3014_v54 = vld [vmem:[#allocation2 + $0x40] sm:$0xff]  ;;  %1837 = vmatpush3.bf16.msra.mxu1 %v1834_v51 }
 0x149   : > { %1719 = vmatprep.mubr.f32.mxu0 %v415_v55 }
 0x14c   : > { %1720 = vmatmul.mubr.f32.gmra.mrb[14].mxu0 %v416_v57  ;;  %v448_v57 = vld [vmem:[%s2830_s24 + $0x78] sm:$0xff] }
 0x14d   : > { %v1838_v12 = vpack.c.bf16 %v448_v57, %v447_v56 }
 0x14f   : > { %1839 = vmatprep.subr.bf16.mxu1 %v1838_v12 }
 0x150   : > { %1841 = vmatpush3.bf16.msra.mxu1 %v1838_v12 }
 0x203   : > { %v2903_v58 = vpop.f32.mrb[0].mxu0 }
 0x204   : > { %v2905_v59 = vpop.f32.mrb[1].mxu0 }
 0x205   : > { %610 = vmax.xlane.f32.xlu0 %v2905_v59 }
 0x207   : > { %v2908_v60 = vpop.f32.mrb[2].mxu0 }
 0x208   : > { %616 = vmax.xlane.f32.xlu1 %v2908_v60  ;;  %v2911_v61 = vpop.f32.mrb[3].mxu0 }
 0x209   : > { %612 = vmax.xlane.f32.xlu0 %v2903_v58 }
 0x20b   : > { %v2914_v62 = vpop.f32.mrb[4].mxu0 }
 0x20c   : > { %614 = vmax.xlane.f32.xlu1 %v2911_v61  ;;  %v2917_v63 = vpop.f32.mrb[5].mxu0 }
 0x20d   : > { %618 = vmax.xlane.f32.xlu0 %v2917_v63 }
 0x20f   : > { %v2920_v0 = vpop.f32.mrb[6].mxu0 }
 0x210   : > { %620 = vmax.xlane.f32.xlu1 %v2914_v62  ;;  %v2923_v1 = vpop.f32.mrb[7].mxu0 }
 0x211   : > { %622 = vmax.xlane.f32.xlu0 %v2923_v1 }
 0x213   : > { %v2926_v2 = vpop.f32.mrb[8].mxu0 }
 0x214   : > { %624 = vmax.xlane.f32.xlu1 %v2920_v0  ;;  %v2929_v3 = vpop.f32.mrb[9].mxu0 }
 0x215   : > { %626 = vmax.xlane.f32.xlu0 %v2929_v3 }
 0x217   : > { %v2932_v5 = vpop.f32.mrb[10].mxu0 }
 0x218   : > { %628 = vmax.xlane.f32.xlu1 %v2926_v2  ;;  %v2935_v6 = vpop.f32.mrb[11].mxu0 }
 0x219   : > { %630 = vmax.xlane.f32.xlu0 %v2935_v6 }
 0x21b   : > { %v2938_v7 = vpop.f32.mrb[12].mxu0 }
 0x21c   : > { %632 = vmax.xlane.f32.xlu1 %v2932_v5  ;;  %v2941_v8 = vpop.f32.mrb[13].mxu0 }
 0x21d   : > { %634 = vmax.xlane.f32.xlu0 %v2941_v8 }
 0x21f   : > { %v2944_v9 = vpop.f32.mrb[14].mxu0 }
 0x220   : > { %636 = vmax.xlane.f32.xlu1 %v2938_v7  ;;  %v2947_v10 = vpop.f32.mrb[15].mxu0 }
 0x221   : > { %638 = vmax.xlane.f32.xlu0 %v2947_v10 }
 0x224   : > { %640 = vmax.xlane.f32.xlu1 %v2944_v9 }
 0x292   : > { %v611_v24 = vpop.xlane.xlu0 %610 }
 0x293   : > { %v2962_v25 = vmax.f32 %v2959_v23, %v611_v24 }
 0x295   : > { %1220 = vst.msk [vmem:[#allocation2] sm:$0xff] %vm914_vm1, %v2962_v25  ;;  %v617_v28 = vpop.xlane.xlu1 %616  ;;  %708 = vperm.xlu0 %2022, %v2962_v25   ;;  %v658_v16 = vsub.f32 %v2959_v23, %v2962_v25 }
 0x296   : > { %v2974_v31 = vmax.f32 %v2964_v26, %v617_v28  ;;  %v613_v32 = vpop.xlane.xlu0 %612 }
 0x297   : > { %v2977_v34 = vmax.f32 %v2966_v27, %v613_v32  ;;  %v674_v24 = vmul.f32 1.442695, %v658_v16 }
 0x298   : > { %1223 = vst.msk [vmem:[#allocation2 + $0x18] sm:$0xff] %vm914_vm1, %v2974_v31  ;;  %v661_v23 = vsub.f32 %v2964_v26, %v2974_v31 }
 0x299   : > { %1221 = vst.msk [vmem:[#allocation2 + $0x8] sm:$0xff] %vm914_vm1, %v2977_v34  ;;  %v615_v37 = vpop.xlane.xlu1 %614  ;;  %713 = vperm.xlu1 %2023, %v2977_v34   ;;  %2024 = vpow2.f32 %v674_v24 }
 0x29a   : > { %v2991_v40 = vmax.f32 %v2979_v35, %v615_v37  ;;  %v619_v41 = vpop.xlane.xlu0 %618  ;;  %v680_v37 = vmul.f32 1.442695, %v661_v23 }
 0x29b   : > { %v2996_v44 = vmax.f32 %v2983_v36, %v619_v41  ;;  %v3052_v41 = vld [vmem:[#allocation2 + $0x78] sm:$0xff] }
 0x29c   : > { %1222 = vst.msk [vmem:[#allocation2 + $0x10] sm:$0xff] %vm914_vm1, %v2991_v40  ;;  %2026 = vpow2.f32 %v680_v37 }
 0x29d   : > { %v621_v46 = vpop.xlane.xlu1 %620  ;;  %723 = vperm.xlu1 %2023, %v2974_v31   ;;  %1224 = vst.msk [vmem:[#allocation2 + $0x20] sm:$0xff] %vm914_vm1, %v2996_v44  ;;  %v662_v12 = vsub.f32 %v2983_v36, %v2996_v44 }
 0x29e   : > { %v647_v49 = vmax.f32 %v2993_v43, %v621_v46  ;;  %v623_v50 = vpop.xlane.xlu0 %622 }
 0x29f   : > { %v3011_v53 = vmax.f32 %v3000_v45, %v623_v50  ;;  %v682_v16 = vmul.f32 1.442695, %v662_v12 }
 0x2a0   : > { %1225 = vst.msk [vmem:[#allocation2 + $0x28] sm:$0xff] %vm914_vm1, %v647_v49  ;;  %v663_v26 = vsub.f32 %v2993_v43, %v647_v49 }
 0x2a1   : > { %v625_v55 = vpop.xlane.xlu1 %624  ;;  %718 = vperm.xlu1 %2023, %v2991_v40   ;;  %1226 = vst.msk [vmem:[#allocation2 + $0x30] sm:$0xff] %vm914_vm1, %v3011_v53 }
 0x2a2   : > { %v649_v4 = vmax.f32 %v3008_v52, %v625_v55  ;;  %v627_v11 = vpop.xlane.xlu0 %626  ;;  %v684_v46 = vmul.f32 1.442695, %v663_v26 }
 0x2a3   : > { %v3023_v14 = vmax.f32 %v3014_v54, %v627_v11 }
 0x2a4   : > { %1227 = vst.msk [vmem:[#allocation2 + $0x38] sm:$0xff] %vm914_vm1, %v649_v4  ;;  %v665_v47 = vsub.f32 %v3008_v52, %v649_v4  ;;  %2028 = vpow2.f32 %v684_v46 }
 0x2a5   : > { %v629_v17 = vpop.xlane.xlu1 %628  ;;  %733 = vperm.xlu1 %2023, %v647_v49   ;;  %1228 = vst.msk [vmem:[#allocation2 + $0x40] sm:$0xff] %vm914_vm1, %v3023_v14  ;;  %v659_v49 = vsub.f32 %v2966_v27, %v2977_v34  ;;  %v660_v27 = vsub.f32 %v2979_v35, %v2991_v40  ;;  %v3077_v34 = vpop.eup %2024 }
 0x2a6   : > { %v651_v18 = vmax.f32 %v603_v13, %v629_v17  ;;  %v631_v19 = vpop.xlane.xlu0 %630  ;;  %v688_v52 = vmul.f32 1.442695, %v665_v47  ;;  %v664_v17 = vsub.f32 %v3000_v45, %v3011_v53 }
 0x2a7   : > { %v3033_v21 = vmax.f32 %v3026_v15, %v631_v19  ;;  %v676_v56 = vmul.f32 1.442695, %v659_v49  ;;  %v678_v11 = vmul.f32 1.442695, %v660_v27  ;;  %v666_v19 = vsub.f32 %v3014_v54, %v3023_v14 }
 0x2a8   : > { %1229 = vst.msk [vmem:[#allocation2 + $0x48] sm:$0xff] %vm914_vm1, %v651_v18  ;;  %753 = vperm.xlu0 %2022, %v651_v18   ;;  %v667_v55 = vsub.f32 %v603_v13, %v651_v18  ;;  %2030 = vpow2.f32 %v688_v52  ;;  %v3083_v13 = vpop.eup %2026 }
 0x2a9   : > { %v633_v25 = vpop.xlane.xlu1 %632  ;;  %728 = vperm.xlu1 %2023, %v2996_v44   ;;  %1230 = vst.msk [vmem:[#allocation2 + $0x50] sm:$0xff] %vm914_vm1, %v3033_v21  ;;  %2032 = vpow2.f32 %v676_v56  ;;  %v686_v44 = vmul.f32 1.442695, %v664_v17  ;;  %v690_v45 = vmul.f32 1.442695, %v666_v19 }
 0x2aa   : > { %v653_v28 = vmax.f32 %v605_v20, %v633_v25  ;;  %v635_v29 = vpop.xlane.xlu0 %634  ;;  %v692_v57 = vmul.f32 1.442695, %v667_v55 }
 0x2ab   : > { %v3044_v32 = vmax.f32 %v3036_v22, %v635_v29 }
 0x2ac   : > { %1231 = vst.msk [vmem:[#allocation2 + $0x58] sm:$0xff] %vm914_vm1, %v653_v28  ;;  %763 = vperm.xlu0 %2022, %v653_v28   ;;  %2034 = vpow2.f32 %v692_v57 }
 0x2ad   : > { %v637_v31 = vpop.xlane.xlu1 %636  ;;  %743 = vperm.xlu1 %2023, %v649_v4   ;;  %1232 = vst.msk [vmem:[#allocation2 + $0x60] sm:$0xff] %vm914_vm1, %v3044_v32  ;;  %v669_v4 = vsub.f32 %v605_v20, %v653_v28  ;;  %2036 = vpow2.f32 %v678_v11 }
 0x2ae   : > { %v655_v38 = vmax.f32 %v607_v30, %v637_v31  ;;  %v639_v39 = vpop.xlane.xlu0 %638  ;;  %v3089_v18 = vpop.eup %2028 }
 0x2af   : > { %v3055_v42 = vmax.f32 %v3047_v33, %v639_v39  ;;  %v696_v35 = vmul.f32 1.442695, %v669_v4 }
 0x2b0   : > { %1233 = vst.msk [vmem:[#allocation2 + $0x68] sm:$0xff] %vm914_vm1, %v655_v38  ;;  %773 = vperm.xlu0 %2022, %v655_v38   ;;  %v671_v40 = vsub.f32 %v607_v30, %v655_v38 }
 0x2b1   : > { %738 = vperm.xlu1 %2023, %v3011_v53   ;;  %v641_v43 = vpop.xlane.xlu1 %640  ;;  %v672_v48 = vsub.f32 %v3047_v33, %v3055_v42  ;;  %1234 = vst.msk [vmem:[#allocation2 + $0x70] sm:$0xff] %vm914_vm1, %v3055_v42  ;;  %2038 = vpow2.f32 %v696_v35  ;;  %v668_v53 = vsub.f32 %v3026_v15, %v3033_v21 }
 0x2b2   : > { %v3067_v50 = vmax.f32 %v3052_v41, %v641_v43  ;;  %v700_v36 = vmul.f32 1.442695, %v671_v40  ;;  %2040 = vpow2.f32 %v682_v16  ;;  %v3095_v20 = vpop.eup %2030 }
 0x2b3   : > { %v3097_v24 = vpop.eup %2032  ;;  %v694_v54 = vmul.f32 1.442695, %v668_v53 }
 0x2b4   : > { %v673_v51 = vsub.f32 %v3052_v41, %v3067_v50  ;;  %1235 = vst.msk [vmem:[#allocation2 + $0x78] sm:$0xff] %vm914_vm1, %v3067_v50  ;;  %783 = vperm.xlu0 %2022, %v3067_v50   ;;  %2042 = vpow2.f32 %v700_v36 }
 0x2b5   : > { %748 = vperm.xlu1 %2023, %v3023_v14   ;;  %2044 = vpow2.f32 %v686_v44  ;;  %v670_v14 = vsub.f32 %v3036_v22, %v3044_v32 }
 0x2b6   : > { %v3103_v23 = vpop.eup %2034  ;;  %2046 = vpow2.f32 %v690_v45 }
 0x2b7   : > { %v3105_v25 = vpop.eup %2036  ;;  %2048 = vpow2.f32 %v694_v54  ;;  %v698_v15 = vmul.f32 1.442695, %v670_v14 }
 0x2b8   : > { %949 = vperm.xlu0 %2022, %v3077_v34  }
 0x2b9   : > { %758 = vperm.xlu1 %2023, %v3033_v21   ;;  %2050 = vpow2.f32 %v698_v15 }
 0x2bb   : > { %v3111_v28 = vpop.eup %2038 }
 0x2bc   : > { %964 = vperm.xlu0 %2022, %v3083_v13   ;;  %v3113_v29 = vpop.eup %2040 }
 0x2bd   : > { %768 = vperm.xlu1 %2023, %v3044_v32  }
 0x2be   : > { %v3117_v21 = vpop.eup %2042 }
 0x2bf   : > { %v3119_v30 = vpop.eup %2044 }
 0x2c0   : > { %974 = vperm.xlu0 %2022, %v3089_v18   ;;  %v3123_v22 = vpop.eup %2046 }
 0x2c1   : > { %778 = vperm.xlu1 %2023, %v3055_v42   ;;  %v3126_v32 = vpop.eup %2048 }
 0x2c3   : > { %v3129_v37 = vpop.eup %2050 }
 0x2c4   : > { %984 = vperm.xlu0 %2022, %v3095_v20  }
 0x2c5   : > { %954 = vperm.xlu1 %2023, %v3097_v24  }
 0x2c8   : > { %994 = vperm.xlu0 %2022, %v3103_v23  }
 0x2c9   : > { %959 = vperm.xlu1 %2023, %v3105_v25  }
 0x2cc   : > { %1004 = vperm.xlu0 %2022, %v3111_v28  }
 0x2cd   : > { %969 = vperm.xlu1 %2023, %v3113_v29  }
 0x2d0   : > { %1014 = vperm.xlu0 %2022, %v3117_v21  }
 0x2d1   : > { %979 = vperm.xlu1 %2023, %v3119_v30  }
 0x2d5   : > { %989 = vperm.xlu1 %2023, %v3123_v22  }
 0x2d9   : > { %999 = vperm.xlu1 %2023, %v3126_v32  }
 0x2dd   : > { %1009 = vperm.xlu1 %2023, %v3129_v37  }
 0x314   : > { %v709_v26 = vpop.permute.xlu0 %708 }
 0x315   : > { %v786_v31 = vsub.f32 %v2905_v59, %v709_v26 }
 0x317   : > { %v802_v38 = vmul.f32 1.442695, %v786_v31 }
 0x318   : > { %v714_v39 = vpop.permute.xlu1 %713 }
 0x319   : > { %2052 = vpow2.f32 %v802_v38  ;;  %v787_v46 = vsub.f32 %v2903_v58, %v714_v39 }
 0x31b   : > { %v804_v47 = vmul.f32 1.442695, %v787_v46 }
 0x31c   : > { %v724_v43 = vpop.permute.xlu1 %723 }
 0x31d   : > { %2054 = vpow2.f32 %v804_v47  ;;  %v789_v49 = vsub.f32 %v2908_v60, %v724_v43 }
 0x31f   : > { %v808_v52 = vmul.f32 1.442695, %v789_v49 }
 0x320   : > { %v719_v55 = vpop.permute.xlu1 %718 }
 0x321   : > { %2056 = vpow2.f32 %v808_v52  ;;  %v788_v56 = vsub.f32 %v2911_v61, %v719_v55 }
 0x323   : > { %v2053_v27 = vpop.eup %2052  ;;  %v806_v57 = vmul.f32 1.442695, %v788_v56 }
 0x324   : > { %v734_v4 = vpop.permute.xlu1 %733  ;;  %866 = vadd.xlane.f32.xlu1 %v2053_v27  ;;  %1754 = vmatprep.mubr.f32.mxu1 %v2053_v27 }
 0x325   : > { %2058 = vpow2.f32 %v806_v57  ;;  %v791_v59 = vsub.f32 %v2914_v62, %v734_v4 }
 0x327   : > { %v2055_v11 = vpop.eup %2054  ;;  %v812_v58 = vmul.f32 1.442695, %v791_v59  ;;  %v754_v12 = vpop.permute.xlu0 %753 }
 0x328   : > { %v729_v35 = vpop.permute.xlu1 %728  ;;  %868 = vadd.xlane.f32.xlu0 %v2055_v11  ;;  %1755 = vmatmul.mubr.f32.vlgmr.msra.gmra.mrb[0].mxu1 %v2055_v11  ;;  %v795_v44 = vsub.f32 %v2926_v2, %v754_v12 }
 0x329   : > { %2060 = vpow2.f32 %v812_v58  ;;  %v790_v60 = vsub.f32 %v2917_v63, %v729_v35 }
 0x32a   : > { %v820_v63 = vmul.f32 1.442695, %v795_v44 }
 0x32b   : > { %v2057_v40 = vpop.eup %2056  ;;  %v810_v16 = vmul.f32 1.442695, %v790_v60  ;;  %v764_v61 = vpop.permute.xlu0 %763 }
 0x32c   : > { %v744_v17 = vpop.permute.xlu1 %743  ;;  %872 = vadd.xlane.f32.xlu1 %v2057_v40  ;;  %v797_v14 = vsub.f32 %v2932_v5, %v764_v61 }
 0x32d   : > { %2062 = vpow2.f32 %v810_v16  ;;  %v793_v36 = vsub.f32 %v2920_v0, %v744_v17  ;;  %v704_v16 = vmul.f32 1.442695, %v673_v51 }
 0x32e   : > { %v824_v2 = vmul.f32 1.442695, %v797_v14 }
 0x32f   : > { %v2059_v62 = vpop.eup %2058  ;;  %v816_v19 = vmul.f32 1.442695, %v793_v36  ;;  %v774_v53 = vpop.permute.xlu0 %773 }
 0x330   : > { %v739_v45 = vpop.permute.xlu1 %738  ;;  %870 = vadd.xlane.f32.xlu0 %v2059_v62  ;;  %1757 = vmatprep.mubr.f32.mxu1 %v2059_v62  ;;  %v799_v38 = vsub.f32 %v2938_v7, %v774_v53 }
 0x331   : > { %2064 = vpow2.f32 %v816_v19  ;;  %v792_v54 = vsub.f32 %v2923_v1, %v739_v45  ;;  %1758 = vmatmul.mubr.f32.gmra.mrb[2].mxu1 %v2057_v40  ;;  %v702_v40 = vmul.f32 1.442695, %v672_v48 }
 0x332   : > { %v828_v5 = vmul.f32 1.442695, %v799_v38 }
 0x333   : > { %v2061_v15 = vpop.eup %2060  ;;  %v814_v26 = vmul.f32 1.442695, %v792_v54  ;;  %v784_v46 = vpop.permute.xlu0 %783 }
 0x334   : > { %v749_v31 = vpop.permute.xlu1 %748  ;;  %876 = vadd.xlane.f32.xlu1 %v2061_v15  ;;  %v801_v49 = vsub.f32 %v2944_v9, %v784_v46 }
 0x335   : > { %2066 = vpow2.f32 %v814_v26  ;;  %v794_v0 = vsub.f32 %v2929_v3, %v749_v31  ;;  %v835_v31 = vld [vmem:[#allocation3 + $0x8] sm:$0xff] }
 0x336   : > { %2068 = vpow2.f32 %v820_v63  ;;  %v832_v56 = vmul.f32 1.442695, %v801_v49  ;;  %v834_v63 = vld [vmem:[#allocation3] sm:$0xff] }
 0x337   : > { %v2063_v39 = vpop.eup %2062  ;;  %v818_v47 = vmul.f32 1.442695, %v794_v0  ;;  %v3162_v33 = vpop.permute.xlu0 %949  ;;  %v850_v14 = vmul.f32 %v3077_v34, %v834_v63  ;;  %v844_v63 = vld [vmem:[#allocation3 + $0x50] sm:$0xff] }
 0x338   : > { %v759_v43 = vpop.permute.xlu1 %758  ;;  %874 = vadd.xlane.f32.xlu0 %v2063_v39  ;;  %1760 = vmatprep.mubr.f32.mxu1 %v2063_v39  ;;  %v837_v39 = vld [vmem:[#allocation3 + $0x18] sm:$0xff] }
 0x339   : > { %2070 = vpow2.f32 %v818_v47  ;;  %v796_v1 = vsub.f32 %v2935_v6, %v759_v43  ;;  %1761 = vmatmul.mubr.f32.gmra.mrb[4].mxu1 %v2061_v15  ;;  %v853_v47 = vmul.f32 %v3083_v13, %v837_v39 }
 0x33a   : > { %2072 = vpow2.f32 %v824_v2  ;;  %v851_v2 = vmul.f32 %v3097_v24, %v835_v31  ;;  %v860_v31 = vmul.f32 %v3126_v32, %v844_v63  ;;  %v848_v32 = vld [vmem:[#allocation3 + $0x70] sm:$0xff] }
 0x33b   : > { %v2065_v52 = vpop.eup %2064  ;;  %v822_v3 = vmul.f32 1.442695, %v796_v1  ;;  %v3166_v48 = vpop.permute.xlu0 %964  ;;  %v836_v1 = vld [vmem:[#allocation3 + $0x10] sm:$0xff] }
 0x33c   : > { %v769_v55 = vpop.permute.xlu1 %768  ;;  %880 = vadd.xlane.f32.xlu1 %v2065_v52  ;;  %v852_v34 = vmul.f32 %v3105_v25, %v836_v1 }
 0x33d   : > { %2074 = vpow2.f32 %v822_v3  ;;  %v798_v7 = vsub.f32 %v2941_v8, %v769_v55 }
 0x33e   : > { %2076 = vpow2.f32 %v828_v5 }
 0x33f   : > { %v2067_v27 = vpop.eup %2066  ;;  %v826_v57 = vmul.f32 1.442695, %v798_v7  ;;  %v3170_v41 = vpop.permute.xlu0 %974  ;;  %v838_v7 = vld [vmem:[#allocation3 + $0x20] sm:$0xff] }
 0x340   : > { %v2069_v4 = vpop.eup %2068  ;;  %878 = vadd.xlane.f32.xlu0 %v2067_v27  ;;  %v779_v59 = vpop.permute.xlu1 %778  ;;  %1763 = vmatprep.mubr.f32.mxu1 %v2067_v27  ;;  %v854_v13 = vmul.f32 %v3113_v29, %v838_v7 }
 0x341   : > { %2078 = vpow2.f32 %v826_v57  ;;  %v800_v6 = vsub.f32 %v2947_v10, %v779_v59  ;;  %884 = vadd.xlane.f32.xlu1 %v2069_v4  ;;  %1764 = vmatmul.mubr.f32.gmra.mrb[6].mxu1 %v2065_v52  ;;  %v839_v52 = vld [vmem:[#allocation3 + $0x28] sm:$0xff]  ;;  %v841_v57 = vld [vmem:[#allocation3 + $0x38] sm:$0xff] }
 0x342   : > { %2080 = vpow2.f32 %v832_v56  ;;  %v855_v24 = vmul.f32 %v3089_v18, %v839_v52  ;;  %v857_v25 = vmul.f32 %v3095_v20, %v841_v57  ;;  %v934_v57 = vld [vmem:[#allocation4 + $0x18] sm:$0xff] }
 0x343   : > { %v2071_v9 = vpop.eup %2070  ;;  %v830_v11 = vmul.f32 1.442695, %v800_v6  ;;  %v3174_v51 = vpop.permute.xlu0 %984  ;;  %v840_v6 = vld [vmem:[#allocation3 + $0x30] sm:$0xff] }
 0x344   : > { %v2073_v58 = vpop.eup %2072  ;;  %882 = vadd.xlane.f32.xlu0 %v2071_v9  ;;  %1766 = vmatprep.mubr.f32.mxu1 %v2071_v9  ;;  %v3160_v36 = vpop.permute.xlu1 %954  ;;  %v856_v18 = vmul.f32 %v3119_v30, %v840_v6 }
 0x345   : > { %2082 = vpow2.f32 %v830_v11  ;;  %888 = vadd.xlane.f32.xlu1 %v2073_v58  ;;  %1767 = vmatmul.mubr.f32.gmra.mrb[8].mxu1 %v2069_v4  ;;  %v843_v11 = vld [vmem:[#allocation3 + $0x48] sm:$0xff] }
 0x346   : > { %2084 = vpow2.f32 %v702_v40 }
 0x347   : > { %v2075_v8 = vpop.eup %2074  ;;  %2086 = vpow2.f32 %v704_v16  ;;  %v3178_v19 = vpop.permute.xlu0 %994 }
 0x348   : > { %v2077_v12 = vpop.eup %2076  ;;  %886 = vadd.xlane.f32.xlu0 %v2075_v8  ;;  %1769 = vmatprep.mubr.f32.mxu1 %v2075_v8  ;;  %v3164_v42 = vpop.permute.xlu1 %959 }
 0x349   : > { %892 = vadd.xlane.f32.xlu1 %v2077_v12  ;;  %1770 = vmatmul.mubr.f32.gmra.mrb[10].mxu1 %v2073_v58  ;;  %v859_v58 = vmul.f32 %v3103_v23, %v843_v11 }
 0x34b   : > { %v2079_v35 = vpop.eup %2078  ;;  %v3182_v53 = vpop.permute.xlu0 %1004 }
 0x34c   : > { %v2081_v60 = vpop.eup %2080  ;;  %890 = vadd.xlane.f32.xlu0 %v2079_v35  ;;  %1772 = vmatprep.mubr.f32.mxu1 %v2079_v35  ;;  %v3168_v44 = vpop.permute.xlu1 %969 }
 0x34d   : > { %896 = vadd.xlane.f32.xlu1 %v2081_v60  ;;  %1773 = vmatmul.mubr.f32.gmra.mrb[12].mxu1 %v2077_v12  ;;  %v842_v12 = vld [vmem:[#allocation3 + $0x40] sm:$0xff] }
 0x34e   : > { %v858_v20 = vmul.f32 %v3123_v22, %v842_v12  ;;  %v846_v22 = vld [vmem:[#allocation3 + $0x60] sm:$0xff] }
 0x34f   : > { %v2083_v10 = vpop.eup %2082  ;;  %v3187_v15 = vpop.permute.xlu0 %1014 }
 0x350   : > { %894 = vadd.xlane.f32.xlu0 %v2083_v10  ;;  %1775 = vmatprep.mubr.f32.mxu1 %v2083_v10  ;;  %v3154_v61 = vpop.eup %2084  ;;  %v3172_v50 = vpop.permute.xlu1 %979 }
 0x351   : > { %1776 = vmatmul.mubr.f32.gmra.mrb[14].mxu1 %v2081_v60  ;;  %v3157_v17 = vpop.eup %2086  ;;  %v845_v60 = vld [vmem:[#allocation3 + $0x58] sm:$0xff] }
 0x352   : > { %v861_v40 = vmul.f32 %v3111_v28, %v845_v60 }
 0x354   : > { %v3176_v62 = vpop.permute.xlu1 %989 }
 0x358   : > { %v3180_v45 = vpop.permute.xlu1 %999 }
 0x35c   : > { %v3184_v54 = vpop.permute.xlu1 %1009 }
 0x35e   : > { %1019 = vperm.xlu1 %2023, %v3154_v61  }
 0x366   : > { %1024 = vperm.xlu0 %2022, %v3157_v17  }
 0x3b1   : > { %v867_v26 = vpop.xlane.xlu1 %866 }
 0x3b2   : > { %v898_v0 = vadd.f32 %v867_v26, %v850_v14  ;;  %v847_v26 = vld [vmem:[#allocation3 + $0x68] sm:$0xff] }
 0x3b4   : > { %915 = vst.msk [vmem:[#allocation3] sm:$0xff] %vm914_vm1, %v898_v0  ;;  %v863_v0 = vmul.f32 %v3117_v21, %v847_v26  ;;  %v864_v21 = vmul.f32 %v3154_v61, %v848_v32  ;;  %v933_v61 = vld [vmem:[#allocation4 + $0x10] sm:$0xff] }
 0x3b5   : > { %v869_v38 = vpop.xlane.xlu0 %868 }
 0x3b6   : > { %v899_v46 = vadd.f32 %v869_v38, %v851_v2 }
 0x3b8   : > { %916 = vst.msk [vmem:[#allocation3 + $0x8] sm:$0xff] %vm914_vm1, %v899_v46  ;;  %v849_v46 = vld [vmem:[#allocation3 + $0x78] sm:$0xff] }
 0x3b9   : > { %v873_v43 = vpop.xlane.xlu1 %872 }
 0x3ba   : > { %v901_v5 = vadd.f32 %v873_v43, %v853_v47  ;;  %v862_v47 = vmul.f32 %v3129_v37, %v846_v22  ;;  %v865_v43 = vmul.f32 %v3157_v17, %v849_v46  ;;  %v932_v37 = vld [vmem:[#allocation4 + $0x8] sm:$0xff]  ;;  %v943_v46 = vld [vmem:[#allocation4 + $0x60] sm:$0xff] }
 0x3bc   : > { %918 = vst.msk [vmem:[#allocation3 + $0x18] sm:$0xff] %vm914_vm1, %v901_v5 }
 0x3bd   : > { %v871_v49 = vpop.xlane.xlu0 %870 }
 0x3be   : > { %v900_v3 = vadd.f32 %v871_v49, %v852_v34 }
 0x3c0   : > { %917 = vst.msk [vmem:[#allocation3 + $0x10] sm:$0xff] %vm914_vm1, %v900_v3 }
 0x3c1   : > { %v877_v55 = vpop.xlane.xlu1 %876 }
 0x3c2   : > { %v903_v56 = vadd.f32 %v877_v55, %v855_v24  ;;  %v931_v24 = vld [vmem:[#allocation4] sm:$0xff]  ;;  %v1028_v55 = vmul.f32 %v3160_v36, %v932_v37  ;;  %v936_v36 = vld [vmem:[#allocation4 + $0x28] sm:$0xff] }
 0x3c3   : > { %v1027_v17 = vmul.f32 %v3162_v33, %v931_v24  ;;  %v935_v33 = vld [vmem:[#allocation4 + $0x20] sm:$0xff] }
 0x3c4   : > { %920 = vst.msk [vmem:[#allocation3 + $0x28] sm:$0xff] %vm914_vm1, %v903_v56 }
 0x3c5   : > { %v875_v27 = vpop.xlane.xlu0 %874 }
 0x3c6   : > { %v902_v4 = vadd.f32 %v875_v27, %v854_v13 }
 0x3c8   : > { %919 = vst.msk [vmem:[#allocation3 + $0x20] sm:$0xff] %vm914_vm1, %v902_v4  ;;  %v1030_v4 = vmul.f32 %v3166_v48, %v934_v57  ;;  %v938_v48 = vld [vmem:[#allocation4 + $0x38] sm:$0xff] }
 0x3c9   : > { %v881_v59 = vpop.xlane.xlu1 %880  ;;  %v1034_v60 = vmul.f32 %v3174_v51, %v938_v48 }
 0x3ca   : > { %v905_v9 = vadd.f32 %v881_v59, %v857_v25  ;;  %v1029_v25 = vmul.f32 %v3164_v42, %v933_v61  ;;  %v937_v42 = vld [vmem:[#allocation4 + $0x30] sm:$0xff] }
 0x3cc   : > { %922 = vst.msk [vmem:[#allocation3 + $0x38] sm:$0xff] %vm914_vm1, %v905_v9 }
 0x3cd   : > { %v879_v8 = vpop.xlane.xlu0 %878 }
 0x3ce   : > { %v885_v29 = vpop.xlane.xlu1 %884  ;;  %v904_v35 = vadd.f32 %v879_v8, %v856_v18  ;;  %v1032_v18 = vmul.f32 %v3170_v41, %v936_v36 }
 0x3cf   : > { %v907_v10 = vadd.f32 %v885_v29, %v859_v58  ;;  %v1031_v58 = vmul.f32 %v3168_v44, %v935_v33  ;;  %v1260_v57 = vld [vmem:[#allocation3 + $0x20] sm:$0xff] (!%p1593_p4) }
 0x3d0   : > { %921 = vst.msk [vmem:[#allocation3 + $0x30] sm:$0xff] %vm914_vm1, %v904_v35 }
 0x3d1   : > { %924 = vst.msk [vmem:[#allocation3 + $0x48] sm:$0xff] %vm914_vm1, %v907_v10  ;;  %v883_v16 = vpop.xlane.xlu0 %882  ;;  %v940_v10 = vld [vmem:[#allocation4 + $0x48] sm:$0xff] }
 0x3d2   : > { %v889_v14 = vpop.xlane.xlu1 %888  ;;  %v906_v30 = vadd.f32 %v883_v16, %v858_v20  ;;  %v1033_v20 = vmul.f32 %v3172_v50, %v937_v42  ;;  %v939_v16 = vld [vmem:[#allocation4 + $0x40] sm:$0xff]  ;;  %v1036_v44 = vmul.f32 %v3178_v19, %v940_v10  ;;  %v944_v50 = vld [vmem:[#allocation4 + $0x68] sm:$0xff] }
 0x3d3   : > { %v909_v23 = vadd.f32 %v889_v14, %v861_v40  ;;  %v1035_v26 = vmul.f32 %v3176_v62, %v939_v16  ;;  %v1040_v62 = vmul.f32 %v3187_v15, %v944_v50  ;;  %v1263_v61 = vld [vmem:[#allocation3 + $0x38] sm:$0xff] (!%p1593_p4) }
 0x3d4   : > { %923 = vst.msk [vmem:[#allocation3 + $0x40] sm:$0xff] %vm914_vm1, %v906_v30  ;;  %v942_v30 = vld [vmem:[#allocation4 + $0x58] sm:$0xff] }
 0x3d5   : > { %926 = vst.msk [vmem:[#allocation3 + $0x58] sm:$0xff] %vm914_vm1, %v909_v23  ;;  %v887_v2 = vpop.xlane.xlu0 %886  ;;  %v1038_v22 = vmul.f32 %v3182_v53, %v942_v30  ;;  %v945_v53 = vld [vmem:[#allocation4 + $0x70] sm:$0xff] }
 0x3d6   : > { %v893_v38 = vpop.xlane.xlu1 %892  ;;  %v908_v39 = vadd.f32 %v887_v2, %v860_v31  ;;  %v941_v31 = vld [vmem:[#allocation4 + $0x50] sm:$0xff] }
 0x3d7   : > { %v911_v28 = vadd.f32 %v893_v38, %v863_v0  ;;  %v1037_v38 = vmul.f32 %v3180_v45, %v941_v31 }
 0x3d8   : > { %925 = vst.msk [vmem:[#allocation3 + $0x50] sm:$0xff] %vm914_vm1, %v908_v39 }
 0x3d9   : > { %928 = vst.msk [vmem:[#allocation3 + $0x68] sm:$0xff] %vm914_vm1, %v911_v28  ;;  %v891_v1 = vpop.xlane.xlu0 %890 }
 0x3da   : > { %v897_v5 = vpop.xlane.xlu1 %896  ;;  %v910_v34 = vadd.f32 %v891_v1, %v862_v47  ;;  %v946_v1 = vld [vmem:[#allocation4 + $0x78] sm:$0xff] }
 0x3db   : > { %v913_v49 = vadd.f32 %v897_v5, %v865_v43  ;;  %v1039_v43 = vmul.f32 %v3184_v54, %v943_v46  ;;  %v1258_v54 = vld [vmem:[#allocation3 + $0x10] sm:$0xff] (!%p1593_p4) }
 0x3dc   : > { %927 = vst.msk [vmem:[#allocation3 + $0x60] sm:$0xff] %vm914_vm1, %v910_v34  ;;  %2090 = vrcp.f32 (!%p1593_p4), %v1258_v54  ;;  %v1267_v33 = vld [vmem:[#allocation3 + $0x58] sm:$0xff] (!%p1593_p4) }
 0x3dd   : > { %930 = vst.msk [vmem:[#allocation3 + $0x78] sm:$0xff] %vm914_vm1, %v913_v49  ;;  %v895_v52 = vpop.xlane.xlu0 %894 }
 0x3de   : > { %v912_v3 = vadd.f32 %v895_v52, %v864_v21  ;;  %v1020_v34 = vpop.permute.xlu1 %1019 }
 0x3e0   : > { %929 = vst.msk [vmem:[#allocation3 + $0x70] sm:$0xff] %vm914_vm1, %v912_v3  ;;  %v1041_v3 = vmul.f32 %v1020_v34, %v945_v53 }
 0x3e4   : > { %v1271_v42 = vld [vmem:[#allocation3 + $0x78] sm:$0xff] (!%p1593_p4) }
 0x3e5   : > { %v1025_v32 = vpop.permute.xlu0 %1024 }
 0x3e6   : > { %v1042_v52 = vmul.f32 %v1025_v32, %v946_v1 }
 0x3e7   : > { %v1270_v10 = vld [vmem:[#allocation3 + $0x70] sm:$0xff] (!%p1593_p4) }
 0x3fb   : > { %v1756_v7 = vpop.f32.mrb[0].mxu1 }
 0x3fc   : > { %v1189_v56 = vadd.f32 %v1756_v7, %v1028_v55  ;;  %v1109_v13 = vpop.f32.mrb[1].mxu1  ;;  %v1259_v7 = vld [vmem:[#allocation3 + $0x18] sm:$0xff] (!%p1593_p4) }
 0x3fd   : > { %v1188_v27 = vadd.f32 %v1109_v13, %v1027_v17  ;;  %v1256_v17 = vld [vmem:[#allocation3] sm:$0xff] (!%p1593_p4)  ;;  %v1257_v13 = vld [vmem:[#allocation3 + $0x8] sm:$0xff] (!%p1593_p4) }
 0x3fe   : > { %1205 = vst [vmem:[#allocation4 + $0x8] sm:$0xff] %v1189_v56  ;;  %v2411_v56 = vmov (!%p1593_p4), 0   ;;  %2092 = vrcp.f32 (!%p1593_p4), %v1256_v17 }
 0x3ff   : > { %1204 = vst [vmem:[#allocation4] sm:$0xff] %v1188_v27  ;;  %2089 = vset.pattern.permute.xlu1 (!%p1593_p4), %v2411_v56  ;;  %2088 = vset.pattern.permute.xlu0 (!%p1593_p4), %v2411_v56  ;;  %2094 = vrcp.f32 (!%p1593_p4), %v1259_v7  ;;  %v1261_v27 = vld [vmem:[#allocation3 + $0x28] sm:$0xff] (!%p1593_p4) }
 0x400   : > { %2096 = vrcp.f32 (!%p1593_p4), %v1257_v13 }
 0x401   : > { %2098 = vrcp.f32 (!%p1593_p4), %v1261_v27 }
 0x402   : > { %2100 = vrcp.f32 (!%p1593_p4), %v1260_v57 }
 0x403   : > { %2102 = vrcp.f32 (!%p1593_p4), %v1263_v61 }
 0x404   : > { %v1759_v59 = vpop.f32.mrb[2].mxu1 }
 0x405   : > { %v1191_v6 = vadd.f32 %v1759_v59, %v1030_v4  ;;  %v1119_v9 = vpop.f32.mrb[3].mxu1  ;;  %v1262_v4 = vld [vmem:[#allocation3 + $0x30] sm:$0xff] (!%p1593_p4) }
 0x406   : > { %v1190_v11 = vadd.f32 %v1119_v9, %v1029_v25  ;;  %v2091_v25 = vpop.eup (!%p1593_p4), %2090  ;;  %2104 = vrcp.f32 (!%p1593_p4), %v1262_v4 }
 0x407   : > { %1207 = vst [vmem:[#allocation4 + $0x18] sm:$0xff] %v1191_v6  ;;  %1300 = vperm.xlu1 (!%p1593_p4), %2089, %v2091_v25   ;;  %v1265_v6 = vld [vmem:[#allocation3 + $0x48] sm:$0xff] (!%p1593_p4) }
 0x408   : > { %1206 = vst [vmem:[#allocation4 + $0x10] sm:$0xff] %v1190_v11  ;;  %v2093_v59 = vpop.eup (!%p1593_p4), %2092  ;;  %v1264_v11 = vld [vmem:[#allocation3 + $0x40] sm:$0xff] (!%p1593_p4)  ;;  %2106 = vrcp.f32 (!%p1593_p4), %v1265_v6 }
 0x409   : > { %v2095_v9 = vpop.eup (!%p1593_p4), %2094  ;;  %1290 = vperm.xlu0 (!%p1593_p4), %2088, %v2093_v59   ;;  %2108 = vrcp.f32 (!%p1593_p4), %v1264_v11 }
 0x40a   : > { %v2097_v36 = vpop.eup (!%p1593_p4), %2096  ;;  %2110 = vrcp.f32 (!%p1593_p4), %v1267_v33 }
 0x40b   : > { %1305 = vperm.xlu1 (!%p1593_p4), %2089, %v2095_v9  }
 0x40c   : > { %v1762_v8 = vpop.f32.mrb[4].mxu1 }
 0x40d   : > { %v1193_v12 = vadd.f32 %v1762_v8, %v1032_v18  ;;  %v1129_v29 = vpop.f32.mrb[5].mxu1  ;;  %v2099_v18 = vpop.eup (!%p1593_p4), %2098  ;;  %1295 = vperm.xlu0 (!%p1593_p4), %2088, %v2097_v36  }
 0x40e   : > { %v1192_v35 = vadd.f32 %v1129_v29, %v1031_v58  ;;  %v1266_v58 = vld [vmem:[#allocation3 + $0x50] sm:$0xff] (!%p1593_p4)  ;;  %v2101_v8 = vpop.eup (!%p1593_p4), %2100 }
 0x40f   : > { %1209 = vst [vmem:[#allocation4 + $0x28] sm:$0xff] %v1193_v12  ;;  %1315 = vperm.xlu1 (!%p1593_p4), %2089, %v2099_v18   ;;  %2112 = vrcp.f32 (!%p1593_p4), %v1266_v58  ;;  %v1269_v12 = vld [vmem:[#allocation3 + $0x68] sm:$0xff] (!%p1593_p4)  ;;  %v2103_v29 = vpop.eup (!%p1593_p4), %2102  ;;  %v1242_v30 = vld [vmem:[#allocation4 + $0x10] sm:$0xff] (!%p1593_p4) }
 0x410   : > { %1208 = vst [vmem:[#allocation4 + $0x20] sm:$0xff] %v1192_v35  ;;  %v1268_v35 = vld [vmem:[#allocation3 + $0x60] sm:$0xff] (!%p1593_p4)  ;;  %v2105_v48 = vpop.eup (!%p1593_p4), %2104  ;;  %2114 = vrcp.f32 (!%p1593_p4), %v1269_v12 }
 0x411   : > { %1310 = vperm.xlu0 (!%p1593_p4), %2088, %v2101_v8   ;;  %2116 = vrcp.f32 (!%p1593_p4), %v1268_v35 }
 0x412   : > { %2118 = vrcp.f32 (!%p1593_p4), %v1271_v42 }
 0x413   : > { %1325 = vperm.xlu1 (!%p1593_p4), %2089, %v2103_v29   ;;  %2120 = vrcp.f32 (!%p1593_p4), %v1270_v10 }
 0x414   : > { %v1765_v40 = vpop.f32.mrb[6].mxu1 }
 0x415   : > { %v1195_v63 = vadd.f32 %v1765_v40, %v1034_v60  ;;  %v1139_v14 = vpop.f32.mrb[7].mxu1  ;;  %v2107_v60 = vpop.eup (!%p1593_p4), %2106  ;;  %1320 = vperm.xlu0 (!%p1593_p4), %2088, %v2105_v48  }
 0x416   : > { %v1194_v41 = vadd.f32 %v1139_v14, %v1033_v20  ;;  %v2109_v20 = vpop.eup (!%p1593_p4), %2108 }
 0x417   : > { %1211 = vst [vmem:[#allocation4 + $0x38] sm:$0xff] %v1195_v63  ;;  %1335 = vperm.xlu1 (!%p1593_p4), %2089, %v2107_v60   ;;  %v2111_v40 = vpop.eup (!%p1593_p4), %2110 }
 0x418   : > { %1210 = vst [vmem:[#allocation4 + $0x30] sm:$0xff] %v1194_v41  ;;  %v1768_v23 = vpop.f32.mrb[8].mxu1 }
 0x419   : > { %v1197_v0 = vadd.f32 %v1768_v23, %v1036_v44  ;;  %v1149_v2 = vpop.f32.mrb[9].mxu1  ;;  %1330 = vperm.xlu0 (!%p1593_p4), %2088, %v2109_v20   ;;  %v2113_v16 = vpop.eup (!%p1593_p4), %2112 }
 0x41a   : > { %v1196_v51 = vadd.f32 %v1149_v2, %v1035_v26  ;;  %v2115_v63 = vpop.eup (!%p1593_p4), %2114  ;;  %v1240_v26 = vld [vmem:[#allocation4] sm:$0xff] (!%p1593_p4) }
 0x41b   : > { %1213 = vst [vmem:[#allocation4 + $0x48] sm:$0xff] %v1197_v0  ;;  %1345 = vperm.xlu1 (!%p1593_p4), %2089, %v2111_v40   ;;  %v2117_v14 = vpop.eup (!%p1593_p4), %2116 }
 0x41c   : > { %1212 = vst [vmem:[#allocation4 + $0x40] sm:$0xff] %v1196_v51  ;;  %v1771_v39 = vpop.f32.mrb[10].mxu1  ;;  %v2119_v41 = vpop.eup (!%p1593_p4), %2118  ;;  %v1243_v51 = vld [vmem:[#allocation4 + $0x18] sm:$0xff] (!%p1593_p4) }
 0x41d   : > { %v1199_v19 = vadd.f32 %v1771_v39, %v1038_v22  ;;  %v1159_v28 = vpop.f32.mrb[11].mxu1  ;;  %1340 = vperm.xlu0 (!%p1593_p4), %2088, %v2113_v16   ;;  %v2121_v44 = vpop.eup (!%p1593_p4), %2120  ;;  %v1241_v22 = vld [vmem:[#allocation4 + $0x8] sm:$0xff] (!%p1593_p4) }
 0x41e   : > { %v1198_v47 = vadd.f32 %v1159_v28, %v1037_v38  ;;  %v1244_v28 = vld [vmem:[#allocation4 + $0x20] sm:$0xff] (!%p1593_p4)  ;;  %v1247_v32 = vld [vmem:[#allocation4 + $0x38] sm:$0xff] (!%p1593_p4) }
 0x41f   : > { %1215 = vst [vmem:[#allocation4 + $0x58] sm:$0xff] %v1199_v19  ;;  %1355 = vperm.xlu1 (!%p1593_p4), %2089, %v2115_v63   ;;  %v1245_v19 = vld [vmem:[#allocation4 + $0x28] sm:$0xff] (!%p1593_p4) }
 0x420   : > { %1214 = vst [vmem:[#allocation4 + $0x50] sm:$0xff] %v1198_v47  ;;  %v1774_v5 = vpop.f32.mrb[12].mxu1 }
 0x421   : > { %v1201_v49 = vadd.f32 %v1774_v5, %v1040_v62  ;;  %v1169_v21 = vpop.f32.mrb[13].mxu1  ;;  %1350 = vperm.xlu0 (!%p1593_p4), %2088, %v2117_v14   ;;  %v1246_v5 = vld [vmem:[#allocation4 + $0x30] sm:$0xff] (!%p1593_p4) }
 0x422   : > { %v1200_v45 = vadd.f32 %v1169_v21, %v1039_v43  ;;  %1239 = sbr.rel (%p1593_p4) target bundleno = 1192 (0x4a8), region = 52 }
 0x423   : > { %1217 = vst [vmem:[#allocation4 + $0x68] sm:$0xff] %v1201_v49  ;;  %1365 = vperm.xlu1 (!%p1593_p4), %2089, %v2119_v41  }
 0x424   : > { %1216 = vst [vmem:[#allocation4 + $0x60] sm:$0xff] %v1200_v45  ;;  %v1777_v37 = vpop.f32.mrb[14].mxu1  ;;  %v1249_v45 = vld [vmem:[#allocation4 + $0x48] sm:$0xff] (!%p1593_p4) }
 0x425   : > { %v1203_v24 = vadd.f32 %v1777_v37, %v1042_v52  ;;  %v1179_v55 = vpop.f32.mrb[15].mxu1  ;;  %1360 = vperm.xlu0 (!%p1593_p4), %2088, %v2121_v44   ;;  %v1248_v52 = vld [vmem:[#allocation4 + $0x40] sm:$0xff] (!%p1593_p4) }
 0x426   : > { %v1202_v15 = vadd.f32 %v1179_v55, %v1041_v3 }
 0x427   : > { %1219 = vst [vmem:[#allocation4 + $0x78] sm:$0xff] %v1203_v24  ;;  %v1250_v54 = vld [vmem:[#allocation4 + $0x50] sm:$0xff] (!%p1593_p4) }
 0x428   : > { %1218 = vst [vmem:[#allocation4 + $0x70] sm:$0xff] %v1202_v15  ;;  %v1251_v15 = vld [vmem:[#allocation4 + $0x58] sm:$0xff] (!%p1593_p4) }
 0x42a   : > { %v1253_v27 = vld [vmem:[#allocation4 + $0x68] sm:$0xff] }
 0x42b   : > { %v1252_v57 = vld [vmem:[#allocation4 + $0x60] sm:$0xff] }
 0x42e   : > { %v1255_v6 = vld [vmem:[#allocation4 + $0x78] sm:$0xff] }
 0x42f   : > { %v1254_v9 = vld [vmem:[#allocation4 + $0x70] sm:$0xff] }
 0x486   : > { %v1301_v23 = vpop.permute.xlu1 %1300 }
 0x487   : > { %v1370_v31 = vmul.f32 %v1301_v23, %v1242_v30 }
 0x488   : > { %v1291_v0 = vpop.permute.xlu0 %1290 }
 0x489   : > { %v1368_v2 = vmul.f32 %v1291_v0, %v1240_v26  ;;  %1386 = vst [vmem:[%s2836_s30 + $0x10] sm:$0xff] %v1370_v31 }
 0x48a   : > { %v1306_v50 = vpop.permute.xlu1 %1305 }
 0x48b   : > { %1384 = vst [vmem:[%s2836_s30] sm:$0xff] %v1368_v2  ;;  %v1371_v38 = vmul.f32 %v1306_v50, %v1243_v51 }
 0x48c   : > { %v1296_v39 = vpop.permute.xlu0 %1295 }
 0x48d   : > { %v1369_v46 = vmul.f32 %v1296_v39, %v1241_v22  ;;  %1387 = vst [vmem:[%s2836_s30 + $0x18] sm:$0xff] %v1371_v38 }
 0x48e   : > { %v1316_v47 = vpop.permute.xlu1 %1315 }
 0x48f   : > { %1385 = vst [vmem:[%s2836_s30 + $0x8] sm:$0xff] %v1369_v46  ;;  %v1373_v62 = vmul.f32 %v1316_v47, %v1245_v19 }
 0x490   : > { %v1311_v43 = vpop.permute.xlu0 %1310 }
 0x491   : > { %v1372_v1 = vmul.f32 %v1311_v43, %v1244_v28  ;;  %1389 = vst [vmem:[%s2836_s30 + $0x28] sm:$0xff] %v1373_v62 }
 0x492   : > { %v1326_v53 = vpop.permute.xlu1 %1325 }
 0x493   : > { %1388 = vst [vmem:[%s2836_s30 + $0x20] sm:$0xff] %v1372_v1  ;;  %v1375_v34 = vmul.f32 %v1326_v53, %v1247_v32 }
 0x494   : > { %v1321_v49 = vpop.permute.xlu0 %1320 }
 0x495   : > { %v1374_v21 = vmul.f32 %v1321_v49, %v1246_v5  ;;  %1391 = vst [vmem:[%s2836_s30 + $0x38] sm:$0xff] %v1375_v34 }
 0x496   : > { %v1336_v3 = vpop.permute.xlu1 %1335 }
 0x497   : > { %1390 = vst [vmem:[%s2836_s30 + $0x30] sm:$0xff] %v1374_v21  ;;  %v1377_v37 = vmul.f32 %v1336_v3, %v1249_v45 }
 0x498   : > { %v1331_v24 = vpop.permute.xlu0 %1330 }
 0x499   : > { %v1376_v55 = vmul.f32 %v1331_v24, %v1248_v52  ;;  %1393 = vst [vmem:[%s2836_s30 + $0x48] sm:$0xff] %v1377_v37 }
 0x49a   : > { %v1346_v17 = vpop.permute.xlu1 %1345 }
 0x49b   : > { %1392 = vst [vmem:[%s2836_s30 + $0x40] sm:$0xff] %v1376_v55  ;;  %v1379_v7 = vmul.f32 %v1346_v17, %v1251_v15 }
 0x49c   : > { %v1341_v56 = vpop.permute.xlu0 %1340 }
 0x49d   : > { %v1378_v13 = vmul.f32 %v1341_v56, %v1250_v54  ;;  %1395 = vst [vmem:[%s2836_s30 + $0x58] sm:$0xff] %v1379_v7 }
 0x49e   : > { %v1356_v61 = vpop.permute.xlu1 %1355 }
 0x49f   : > { %1394 = vst [vmem:[%s2836_s30 + $0x50] sm:$0xff] %v1378_v13  ;;  %v1381_v4 = vmul.f32 %v1356_v61, %v1253_v27 }
 0x4a0   : > { %v1351_v25 = vpop.permute.xlu0 %1350 }
 0x4a1   : > { %v1380_v59 = vmul.f32 %v1351_v25, %v1252_v57  ;;  %1397 = vst [vmem:[%s2836_s30 + $0x68] sm:$0xff] %v1381_v4 }
 0x4a2   : > { %v1366_v11 = vpop.permute.xlu1 %1365 }
 0x4a3   : > { %1396 = vst [vmem:[%s2836_s30 + $0x60] sm:$0xff] %v1380_v59  ;;  %v1383_v36 = vmul.f32 %v1366_v11, %v1255_v6 }
 0x4a4   : > { %v1361_v33 = vpop.permute.xlu0 %1360 }
 0x4a5   : > { %v1382_v18 = vmul.f32 %v1361_v33, %v1254_v9  ;;  %1399 = vst [vmem:[%s2836_s30 + $0x78] sm:$0xff] %v1383_v36 }
 0x4a7   : > { %1398 = vst [vmem:[%s2836_s30 + $0x70] sm:$0xff] %v1382_v18 }
 0x4a8 PF: > { %s3454_s2 = sld [smem:[#allocation20_spill]]  ;;  %s3455_s9 = sld [smem:[#allocation21_spill]] }
 0x4a9   : > { %s3456_s12 = sld [smem:[#allocation22_spill]]  ;;  %s3457_s4 = sld [smem:[#allocation33_spill]] }
 0x4aa   : > { %s1418_s5 = sshll.u32 %s2836_s30, 4  ;;  %s3458_s28 = sld [smem:[#allocation38_spill]]  ;;  %s3255_s5 = int_to_ptr.vmem [resolvable:$true] %s1418_s5 }
 0x4ab   : > { %s1401_s11 = scalar_lea.sflag [#allocation7], %s2811_s6  ;;  %s2214_s27 = scalar_lea.vmem %s3255_s5, 2048 }
 0x4ac   : > { %p2215_p7 = scmp.ne.s32.totalorder %s3255_s5, %s2214_s27 }
 0x4ae   : > { %s1601_s23 = sshll.u32 %s3454_s2, 5  ;;  %s2412_s2 = smov [#allocation11]  }
 0x4af   : > { %s1413_s8 = sadd.s32 %s3455_s9, %s1601_s23  ;;  %s1597_s1 = sshll.u32 %s3456_s12, 6 }
 0x4b0   : > { %s1415_s21 = sadd.s32 %s1597_s1, %s1413_s8  ;;  %s3459_s10 = smov %s3458_s28 }
 0x4b1   : > { %s1598_s15 = sshll.u32 %s1415_s21, 7  ;;  %p3460_p9 = scmp.ne.s32.totalorder %s3457_s4, 0 }
 0x4b2   : > { %s3260_s24 = scalar_lea.hbm %s3458_s28, %s1598_s15  ;;  %s2218_s9 = sshll.u32 %s2412_s2, 4  ;;  %s2219_s9 = int_to_ptr.vmem [resolvable:$false] %s2218_s9 }
 0x4b3   : > { %p2216_p5 = pnand %p2215_p7, %p3460_p9  ;;  %s2220_s30 = scalar_lea.vmem %s2219_s9, 4096 }
 0x4b4   : > { %p2221_p13 = scmp.lt.s32.totalorder %s3255_s5, %s2219_s9  ;;  %p2222_p3 = scmp.lt.s32.totalorder %s2220_s30, %s2214_s27 }
 0x4b5   : > { %p2217_p10 = pneg %p2216_p5 }
 0x4b6   : > { %p2223_p2 = por %p2222_p3, %p2221_p13 }
 0x4b8   : > { %p2224_p8 = pnand %p2223_p2, %p2217_p10 }
 0x4ba   : > { %2227 = shalt.err (!%p2224_p8)
}
 0x4bb   : > { %s2228_s12 = scalar_lea.hbm %s3260_s24, 2048  ;;  %s2232_s1 = scalar_lea.hbm %s3459_s10, 16384 }
 0x4bc   : > { %p2229_p6 = scmp.ne.s32.totalorder %s3260_s24, %s2228_s12  ;;  %p2233_p0 = scmp.lt.u32.totalorder %s3260_s24, %s3459_s10 }
 0x4bd   : > { %p2234_p12 = scmp.lt.u32.totalorder %s2232_s1, %s2228_s12  ;;  %p2236_p7 = scmp.lt.u32.totalorder %s2228_s12, %s3260_s24 }
 0x4be   : > { %p2230_p11 = pnand %p2229_p6, %p3460_p9 }
 0x4bf   : > { %p2235_p4 = por %p2234_p12, %p2233_p0 }
 0x4c0   : > { %p2231_p1 = pneg %p2230_p11 }
 0x4c1   : > { %p2237_p5 = por %p2236_p7, %p2235_p4 }
 0x4c3   : > { %p2238_p10 = pnand %p2237_p5, %p2231_p1 }
 0x4c5   : > { %2241 = shalt.err (!%p2238_p10)
}
 0x4c6   : > { %s2413_s27 = smov 128   ;;  %s2414_s16 = smov 256  }
 0x4c7   : > { %s2415_s0 = smov 8  }
 0x4c8   : > { %1850 = dma.vmem_to_hbm [thread:$0]  (%p3460_p9), %s3255_s5, 2048, %s3260_s24, %s1401_s11, %s2413_s27, %s2414_s16, %s2415_s0  }
 0x4c9 PF: > { %p1867_p13 = scmp.ge.s32.totalorder %s2400_s29, 2  ;;  %s1433_s28 = sand.u32 1, %s2356_s18  }
 0x4ca   : > { %p3461_p3 = scmp.ne.s32.totalorder %s3423_s13, 0  ;;  %s1434_s2 = scalar_lea.sflag [#allocation7], %s1433_s28 }
 0x4cc   : > { %p1863_p2 = pnand %p1867_p13, %p3461_p3 }
 0x4ce   : > { %2327 = dma.done.wait (!%p1863_p2), %s1434_s2, 2048  }
 0x4cf   : > { %2329 = vsyncadd (!%p1863_p2), %s1434_s2, 4294965248  ;;  %s22_s29 = sadd.s32 1, %s2400_s29   ;;  %s3463_s12 = sld [smem:[#allocation17_spill]] }
 0x4d0   : > { %p3291_p8 = scmp.ge.s32.totalorder %s22_s29, 18   ;;  %s3464_s15 = sld [smem:[#allocation18_spill]] }
 0x4d1   : > { %s3465_s23 = sld [smem:[#allocation23_spill]]  ;;  %s3466_s24 = sld [smem:[#allocation24_spill]] }
 0x4d2   : > { %s3467_s6 = sld [smem:[#allocation25_spill]]  ;;  %s3468_s4 = sld [smem:[#allocation30_spill]] }
 0x4d3   : > { %s3469_s27 = sld [smem:[#allocation32_spill]]  ;;  %s3470_s28 = sld [smem:[#allocation34_spill]] }
 0x4d4   : > { %s3471_s13 = smov %s2340_s14  ;;  %s3472_s14 = smov %s2753_s3 }
 0x4d5   : > { %s3473_s16 = smov %s2352_s17  ;;  %s3474_s17 = smov %s2693_s7 }
 0x4d6   : > { %s3475_s18 = smov %s2360_s19  ;;  %s3476_s19 = smov %s2364_s20 }
 0x4d7   : > { %s3477_s20 = smov %s2688_s22  ;;  %s3478_s21 = smov %s2384_s25 }
 0x4d8   : > { %s3479_s22 = smov %s2388_s26  ;;  %s3480_s25 = smov %s3467_s6 }
 0x4d9   : > { %s3481_s26 = smov %s3468_s4  ;;  %21 = sbr.rel (!%p3291_p8) target bundleno = 19 (0x13), region = 109 }
 0x4e0   :  { %1439 = vsyncpa [#allocation6], 1 }
 0x4e1   :  { %1441 = vsyncpa [#allocation6 + $0x1], 1 }
 0x4e2   :  { %1442 = vsyncpa [#allocation9], 1 }
 0x4e3   :  { %1444 = vsyncpa [#allocation9 + $0x1], 1 }
 0x4e4   :  { %1445 = vsyncpa [#allocation7], 1 }
 0x4e5   :  { %1447 = vsyncpa [#allocation7 + $0x1], 1 }

</bundles_post_ra>
